<compile_context>
chip_gen: v7x
topology: tpu7x:2x2x1
jax: 0.10.0
libtpu: 0.0.40
codegen_flags: <defaults>
</compile_context>

<pallas_src>
import functools

import jax
import jax.numpy as jnp
from jax.experimental import pallas as pl
from jax.experimental.pallas import tpu as pltpu

_VMEM_LIMIT = 48 * 1024 * 1024   # comfortably below v7x's 64 MiB physical VMEM


# ---------------------------------------------------------------------------
# Pallas kernels
# ---------------------------------------------------------------------------
def _conv3x3_row_kernel(x0_ref, x1_ref, x2_ref, w_ref, o_ref, *, T):
    """One (b, v) output row of a 3x3 stride-1 'same' conv, channels-last.

    x{0,1,2}_ref : (1, 1, T+2, Cin)  padded input rows v, v+1, v+2 (halo)
    w_ref        : (3, 3, Cin, Cout) VMEM-resident weights
    o_ref        : (1, 1, T, Cout)
    """
    rows = (x0_ref[0, 0], x1_ref[0, 0], x2_ref[0, 0])        # each (T+2, Cin)
    w = w_ref[...]                                           # (3, 3, Cin, Cout)
    acc = None
    for ky in range(3):                                      # static unroll (9 taps)
        r = rows[ky]
        for kx in range(3):
            part = jnp.dot(r[kx:kx + T, :], w[ky, kx],
                           preferred_element_type=jnp.float32)
            acc = part if acc is None else acc + part
    o_ref[0, 0] = acc.astype(o_ref.dtype)


def _attn_kernel(qkv_ref, o_ref, *, c, c1, T, approx):
    """Batched softmax(Q K^T) V for G rows of (b*v).

    qkv_ref : (G, T, 2c + c1)  fused q|k|v channels (sliced in-kernel)
    o_ref   : (G, T * c1)      lane-dense output slab
    """
    qkv = qkv_ref[...]
    q = qkv[..., 0:c]
    k = qkv[..., c:2 * c]
    v = qkv[..., 2 * c:2 * c + c1]
    # Q @ K^T without an explicit transpose: contract the channel dim.
    s = jnp.einsum("gqd,gkd->gqk", q, k, preferred_element_type=jnp.float32)
    s = s - jnp.max(s, axis=-1, keepdims=True)
    p = jnp.exp(s)
    denom = jnp.sum(p, axis=-1, keepdims=True)
    if approx:
        p = p * pl.reciprocal(denom, approx=True)            # EUP, ~free
    else:
        p = p / denom                                        # exact (f32 check path)
    av = jnp.einsum("gqk,gkd->gqd", p.astype(v.dtype), v,
                    preferred_element_type=jnp.float32)       # (G, T, c1)
    o_ref[...] = av.reshape(av.shape[0], T * c1).astype(o_ref.dtype)


# ---------------------------------------------------------------------------
# Pallas wrappers
# ---------------------------------------------------------------------------
def conv3x3_nhwc(xpad, w, *, out_dtype):
    """3x3 conv, pad=1, stride=1, no bias, channels-last.

    xpad : (B, V+2, T+2, Cin) zero-padded input
    w    : (3, 3, Cin, Cout)
    ->     (B, V, T, Cout)
    """
    B, Vp, Tp, Cin = xpad.shape
    V, T = Vp - 2, Tp - 2
    Cout = w.shape[-1]

    def row_spec(ky):
        return pl.BlockSpec((1, 1, Tp, Cin),
                            lambda b, v, ky=ky: (b, v + ky, 0, 0))

    kernel = functools.partial(_conv3x3_row_kernel, T=T)
    return pl.pallas_call(
        kernel,
        out_shape=jax.ShapeDtypeStruct((B, V, T, Cout), out_dtype),
        grid=(B, V),
        in_specs=[row_spec(0), row_spec(1), row_spec(2),
                  pl.BlockSpec((3, 3, Cin, Cout), lambda b, v: (0, 0, 0, 0))],
        out_specs=pl.BlockSpec((1, 1, T, Cout), lambda b, v: (b, v, 0, 0)),
        compiler_params=pltpu.CompilerParams(
            dimension_semantics=("parallel", "parallel"),
            vmem_limit_bytes=_VMEM_LIMIT),
    )(xpad, xpad, xpad, w)


def _pick_group(bv):
    # Largest multiple of 8 dividing bv (keeps the output block sublane-legal);
    # fall back to the full batch (full-array block is always legal).
    for g in (64, 32, 16, 8):
        if bv % g == 0:
            return g
    return bv


def batched_attention(qkv, *, c, c1, out_dtype, approx):
    """qkv: (BV, T, 2c+c1) -> (BV, T*c1) = softmax(q k^T) v per (b*v) row."""
    BV, T, Ct = qkv.shape
    G = _pick_group(BV)
    kernel = functools.partial(_attn_kernel, c=c, c1=c1, T=T, approx=approx)
    return pl.pallas_call(
        kernel,
        out_shape=jax.ShapeDtypeStruct((BV, T * c1), out_dtype),
        grid=(BV // G,),
        in_specs=[pl.BlockSpec((G, T, Ct), lambda i: (i, 0, 0))],
        out_specs=pl.BlockSpec((G, T * c1), lambda i: (i, 0)),
        compiler_params=pltpu.CompilerParams(
            dimension_semantics=("parallel",),
            vmem_limit_bytes=_VMEM_LIMIT),
    )(qkv)


# ---------------------------------------------------------------------------
# tAttn forward
# ---------------------------------------------------------------------------
def tattn_forward(params, x, compute_dtype=jnp.bfloat16):
    """x: (B, C, V, T) NCHW, matching the PyTorch module's conv input layout."""
    B, C, V, T = x.shape
    c = C // 8                       # query/key channels
    c1 = C // 2                      # value channels
    cd = compute_dtype
    approx = (cd == jnp.bfloat16)

    # Single layout transpose on the input side: NCHW -> NHWC + spatial pad.
    x_nhwc = jnp.transpose(x, (0, 2, 3, 1)).astype(cd)
    xpad = jnp.pad(x_nhwc, ((0, 0), (1, 1), (1, 1), (0, 0)))

    # Fused q|k|v conv weights: (Cout_q+Cout_k+Cout_v, C, 3, 3) -> (3,3,C,2c+c1).
    w_qkv = jnp.concatenate(
        [params["query_w"], params["key_w"], params["value_w"]], axis=0)
    w_qkv = jnp.transpose(w_qkv, (2, 3, 1, 0)).astype(cd)

    qkv = conv3x3_nhwc(xpad, w_qkv, out_dtype=cd)             # (B, V, T, 2c+c1)
    qkv = qkv.reshape(B * V, T, 2 * c + c1)                   # '(b v) t c' — free

    av = batched_attention(qkv, c=c, c1=c1, out_dtype=cd, approx=approx)
    av = av.reshape(B, V, T, c1)                              # free reshape
    avpad = jnp.pad(av, ((0, 0), (1, 1), (1, 1), (0, 0)))

    # sigma * conv(av, w) == conv(av, sigma * w): fold sigma into the weight.
    w_out = (params["sigma"][0]
             * jnp.transpose(params["attn_value_w"], (2, 3, 1, 0))).astype(cd)
    out = conv3x3_nhwc(avpad, w_out, out_dtype=jnp.float32)   # (B, V, T, C)
    return jnp.transpose(out, (0, 3, 1, 2))                   # NHWC -> NCHW


# ---------------------------------------------------------------------------
# Pure-JAX reference (matches the PyTorch module semantics)
# ---------------------------------------------------------------------------
def _conv_ref(y, w):
    return jax.lax.conv_general_dilated(
        y, w, window_strides=(1, 1), padding=((1, 1), (1, 1)),
        dimension_numbers=("NCHW", "OIHW", "NCHW"),
        precision=jax.lax.Precision.HIGHEST)


def tattn_reference(params, x):
    B, C, V, T = x.shape
    hp = jax.lax.Precision.HIGHEST

    def bvtc(y):
        b, ch, v, t = y.shape
        return y.transpose(0, 2, 3, 1).reshape(b * v, t, ch)

    qr = bvtc(_conv_ref(x, params["query_w"]))
    kr = bvtc(_conv_ref(x, params["key_w"]))
    vr = bvtc(_conv_ref(x, params["value_w"]))
    attn = jax.nn.softmax(jnp.einsum("btc,bsc->bts", qr, kr, precision=hp), axis=-1)
    av = jnp.einsum("bts,bsc->btc", attn, vr, precision=hp)
    av = av.reshape(B, V, T, C // 2).transpose(0, 3, 1, 2)
    return params["sigma"][0] * _conv_ref(av, params["attn_value_w"])


def init_params(key, in_channels):
    out_channels = in_channels // 8
    k1, k2, k3, k4 = jax.random.split(key, 4)
    scale = 0.1
    return {
        "query_w": scale * jax.random.normal(k1, (out_channels, in_channels, 3, 3), jnp.float32),
        "key_w": scale * jax.random.normal(k2, (out_channels, in_channels, 3, 3), jnp.float32),
        "value_w": scale * jax.random.normal(k3, (in_channels // 2, in_channels, 3, 3), jnp.float32),
        "attn_value_w": scale * jax.random.normal(k4, (in_channels, in_channels // 2, 3, 3), jnp.float32),
        # PyTorch inits sigma to zeros(1); use a nonzero value so the full
        # compute path is exercised (zero sigma makes the output trivially 0).
        "sigma": jnp.full((1,), 0.5, jnp.float32),
    }


if __name__ == "__main__":
    B, C, V, T = 2, 32, 8, 8          # in_channels=32 -> C//8=4, C//2=16
    key = jax.random.PRNGKey(0)
    k_x, k_p = jax.random.split(key)
    x = jax.random.normal(k_x, (B, C, V, T), jnp.float32)
    params = init_params(k_p, C)

    ref = tattn_reference(params, x)

    # f32 path: tight structural/numerical check against the pure-JAX reference.
    fwd_f32 = jax.jit(functools.partial(tattn_forward, compute_dtype=jnp.float32))
    out_f32 = jax.block_until_ready(fwd_f32(params, x))
    assert out_f32.shape == (B, C, V, T)
    assert jnp.allclose(out_f32, ref, atol=1e-3, rtol=1e-3), "f32 mismatch vs reference"

    # bf16 MXU path (v6e/v7x fast path): bf16 operands, f32 accumulation.
    fwd_bf16 = jax.jit(functools.partial(tattn_forward, compute_dtype=jnp.bfloat16))
    out_bf16 = jax.block_until_ready(fwd_bf16(params, x)).astype(jnp.float32)
    assert out_bf16.shape == (B, C, V, T)
    rel = jnp.linalg.norm(out_bf16 - ref) / (jnp.linalg.norm(ref) + 1e-12)
    assert bool(jnp.isfinite(rel)) and float(rel) < 1e-1, f"bf16 rel-L2 error {rel}"

    print("KERNEL_OK")
</pallas_src>

<mosaic_0001>
module attributes {stable_mosaic.version = 11 : i64} {
  func.func @_attn_kernel(%arg0: i32, %arg1: memref<16x8x24xf32, #tpu.memory_space<vmem>>, %arg2: memref<16x128xf32, #tpu.memory_space<vmem>>) attributes {dimension_semantics = [#tpu.dimension_semantics<parallel>], iteration_bounds = array<i64: 1>, scalar_prefetch = 0 : i64, scratch_operands = 0 : i64, tpu.core_type = #tpu.core_type<tc>, window_params = [{transform_indices = @transform_0, window_bounds = array<i64: 16, 8, 24>}, {transform_indices = @transform_1, window_bounds = array<i64: 16, 128>}]} {
    %c0 = arith.constant 0 : index
    %c0_0 = arith.constant 0 : index
    %c0_1 = arith.constant 0 : index
    %0 = vector.load %arg1[%c0, %c0_0, %c0_1] : memref<16x8x24xf32, #tpu.memory_space<vmem>>, vector<16x8x24xf32>
    %1 = vector.extract_strided_slice %0 {offsets = [0, 0, 0], sizes = [16, 8, 4], strides = [1, 1, 1]} : vector<16x8x24xf32> to vector<16x8x4xf32>
    %2 = vector.extract_strided_slice %0 {offsets = [0, 0, 4], sizes = [16, 8, 4], strides = [1, 1, 1]} : vector<16x8x24xf32> to vector<16x8x4xf32>
    %3 = vector.extract_strided_slice %0 {offsets = [0, 0, 8], sizes = [16, 8, 16], strides = [1, 1, 1]} : vector<16x8x24xf32> to vector<16x8x16xf32>
    "tpu.trace_start"() <{level = 10 : i32, message = "gqd,gkd->gqk"}> : () -> ()
    %cst = arith.constant dense<0.000000e+00> : vector<16x8x8xf32>
    %4 = tpu.matmul %1, %2, %cst {dimension_numbers = #tpu.dot_dimension_numbers<[2], [2], [1], [1], [0, 0, 0, 1, 1, 1], [0], [0]>} : vector<16x8x4xf32>, vector<16x8x4xf32>, vector<16x8x8xf32> -> vector<16x8x8xf32>
    "tpu.trace_stop"() : () -> ()
    %cst_2 = arith.constant dense<0xFF800000> : vector<16x8xf32>
    %5 = vector.multi_reduction <maximumf>, %4, %cst_2 [2] : vector<16x8x8xf32> to vector<16x8xf32>
    %6 = vector.shape_cast %5 : vector<16x8xf32> to vector<16x8x1xf32>
    %7 = vector.broadcast %6 : vector<16x8x1xf32> to vector<16x8x8xf32>
    %8 = arith.subf %4, %7 : vector<16x8x8xf32>
    %9 = math.exp %8 : vector<16x8x8xf32>
    %cst_3 = arith.constant dense<0.000000e+00> : vector<16x8xf32>
    %10 = vector.multi_reduction <add>, %9, %cst_3 [2] : vector<16x8x8xf32> to vector<16x8xf32>
    %11 = vector.shape_cast %10 : vector<16x8xf32> to vector<16x8x1xf32>
    %12 = vector.broadcast %11 : vector<16x8x1xf32> to vector<16x8x8xf32>
    %13 = arith.divf %9, %12 : vector<16x8x8xf32>
    "tpu.trace_start"() <{level = 10 : i32, message = "gqk,gkd->gqd"}> : () -> ()
    %cst_4 = arith.constant dense<0.000000e+00> : vector<16x8x16xf32>
    %14 = tpu.matmul %13, %3, %cst_4 {dimension_numbers = #tpu.dot_dimension_numbers<[2], [1], [1], [2], [0, 0, 0, 1, 1, 2], [0], [0]>} : vector<16x8x8xf32>, vector<16x8x16xf32>, vector<16x8x16xf32> -> vector<16x8x16xf32>
    "tpu.trace_stop"() : () -> ()
    %15 = vector.shape_cast %14 : vector<16x8x16xf32> to vector<16x128xf32>
    %c0_5 = arith.constant 0 : index
    %c0_6 = arith.constant 0 : index
    %16 = vector.load %arg2[%c0_5, %c0_6] : memref<16x128xf32, #tpu.memory_space<vmem>>, vector<16x128xf32>
    tpu.vector_store %arg2[%c0_5, %c0_6], %15 {strides = array<i32>} : memref<16x128xf32, #tpu.memory_space<vmem>>, vector<16x128xf32>,
    return
  }
  func.func @transform_0(%arg0: i32) -> (i32, i32, i32) {
    %c0_i32 = arith.constant 0 : i32
    %c0_i32_0 = arith.constant 0 : i32
    %c0_i32_1 = arith.constant 0 : i32
    return %arg0, %c0_i32, %c0_i32_0 : i32, i32, i32
  }
  func.func @transform_1(%arg0: i32) -> (i32, i32) {
    %c0_i32 = arith.constant 0 : i32
    %c0_i32_0 = arith.constant 0 : i32
    return %arg0, %c0_i32 : i32, i32
  }
}

module attributes {stable_mosaic.version = 11 : i64} {
  func.func @_conv3x3_row_kernel(%arg0: i32, %arg1: i32, %arg2: memref<1x1x10x32xf32, #tpu.memory_space<vmem>>, %arg3: memref<1x1x10x32xf32, #tpu.memory_space<vmem>>, %arg4: memref<1x1x10x32xf32, #tpu.memory_space<vmem>>, %arg5: memref<3x3x32x24xf32, #tpu.memory_space<vmem>>, %arg6: memref<1x1x8x24xf32, #tpu.memory_space<vmem>>) attributes {dimension_semantics = [#tpu.dimension_semantics<parallel>, #tpu.dimension_semantics<parallel>], iteration_bounds = array<i64: 2, 8>, scalar_prefetch = 0 : i64, scratch_operands = 0 : i64, tpu.core_type = #tpu.core_type<tc>, window_params = [{transform_indices = @transform_0, window_bounds = array<i64: 1, 1, 10, 32>}, {transform_indices = @transform_1, window_bounds = array<i64: 1, 1, 10, 32>}, {transform_indices = @transform_2, window_bounds = array<i64: 1, 1, 10, 32>}, {pipeline_mode = #tpu.pipeline_mode<synchronous>, transform_indices = @transform_3, window_bounds = array<i64: 3, 3, 32, 24>}, {transform_indices = @transform_4, window_bounds = array<i64: 1, 1, 8, 24>}]} {
    %c0 = arith.constant 0 : index
    %c0_0 = arith.constant 0 : index
    %c0_1 = arith.constant 0 : index
    %c0_2 = arith.constant 0 : index
    %0 = vector.load %arg2[%c0, %c0_0, %c0_1, %c0_2] : memref<1x1x10x32xf32, #tpu.memory_space<vmem>>, vector<1x1x10x32xf32>
    %1 = vector.shape_cast %0 : vector<1x1x10x32xf32> to vector<10x32xf32>
    %c0_3 = arith.constant 0 : index
    %c0_4 = arith.constant 0 : index
    %c0_5 = arith.constant 0 : index
    %c0_6 = arith.constant 0 : index
    %2 = vector.load %arg3[%c0_3, %c0_4, %c0_5, %c0_6] : memref<1x1x10x32xf32, #tpu.memory_space<vmem>>, vector<1x1x10x32xf32>
    %3 = vector.shape_cast %2 : vector<1x1x10x32xf32> to vector<10x32xf32>
    %c0_7 = arith.constant 0 : index
    %c0_8 = arith.constant 0 : index
    %c0_9 = arith.constant 0 : index
    %c0_10 = arith.constant 0 : index
    %4 = vector.load %arg4[%c0_7, %c0_8, %c0_9, %c0_10] : memref<1x1x10x32xf32, #tpu.memory_space<vmem>>, vector<1x1x10x32xf32>
    %5 = vector.shape_cast %4 : vector<1x1x10x32xf32> to vector<10x32xf32>
    %c0_11 = arith.constant 0 : index
    %c0_12 = arith.constant 0 : index
    %c0_13 = arith.constant 0 : index
    %c0_14 = arith.constant 0 : index
    %6 = vector.load %arg5[%c0_11, %c0_12, %c0_13, %c0_14] : memref<3x3x32x24xf32, #tpu.memory_space<vmem>>, vector<3x3x32x24xf32>
    %7 = vector.extract_strided_slice %1 {offsets = [0, 0], sizes = [8, 32], strides = [1, 1]} : vector<10x32xf32> to vector<8x32xf32>
    %8 = vector.extract_strided_slice %6 {offsets = [0, 0, 0, 0], sizes = [1, 1, 32, 24], strides = [1, 1, 1, 1]} : vector<3x3x32x24xf32> to vector<1x1x32x24xf32>
    %9 = vector.shape_cast %8 : vector<1x1x32x24xf32> to vector<32x24xf32>
    %cst = arith.constant dense<0.000000e+00> : vector<8x24xf32>
    %10 = tpu.matmul %7, %9, %cst {dimension_numbers = #tpu.dot_dimension_numbers<[1], [0], [0], [1], [0, 0, 1, 1], [], []>} : vector<8x32xf32>, vector<32x24xf32>, vector<8x24xf32> -> vector<8x24xf32>
    %11 = vector.extract_strided_slice %1 {offsets = [1, 0], sizes = [8, 32], strides = [1, 1]} : vector<10x32xf32> to vector<8x32xf32>
    %12 = vector.extract_strided_slice %6 {offsets = [0, 1, 0, 0], sizes = [1, 1, 32, 24], strides = [1, 1, 1, 1]} : vector<3x3x32x24xf32> to vector<1x1x32x24xf32>
    %13 = vector.shape_cast %12 : vector<1x1x32x24xf32> to vector<32x24xf32>
    %cst_15 = arith.constant dense<0.000000e+00> : vector<8x24xf32>
    %14 = tpu.matmul %11, %13, %cst_15 {dimension_numbers = #tpu.dot_dimension_numbers<[1], [0], [0], [1], [0, 0, 1, 1], [], []>} : vector<8x32xf32>, vector<32x24xf32>, vector<8x24xf32> -> vector<8x24xf32>
    %15 = arith.addf %10, %14 : vector<8x24xf32>
    %16 = vector.extract_strided_slice %1 {offsets = [2, 0], sizes = [8, 32], strides = [1, 1]} : vector<10x32xf32> to vector<8x32xf32>
    %17 = vector.extract_strided_slice %6 {offsets = [0, 2, 0, 0], sizes = [1, 1, 32, 24], strides = [1, 1, 1, 1]} : vector<3x3x32x24xf32> to vector<1x1x32x24xf32>
    %18 = vector.shape_cast %17 : vector<1x1x32x24xf32> to vector<32x24xf32>
    %cst_16 = arith.constant dense<0.000000e+00> : vector<8x24xf32>
    %19 = tpu.matmul %16, %18, %cst_16 {dimension_numbers = #tpu.dot_dimension_numbers<[1], [0], [0], [1], [0, 0, 1, 1], [], []>} : vector<8x32xf32>, vector<32x24xf32>, vector<8x24xf32> -> vector<8x24xf32>
    %20 = arith.addf %15, %19 : vector<8x24xf32>
    %21 = vector.extract_strided_slice %3 {offsets = [0, 0], sizes = [8, 32], strides = [1, 1]} : vector<10x32xf32> to vector<8x32xf32>
    %22 = vector.extract_strided_slice %6 {offsets = [1, 0, 0, 0], sizes = [1, 1, 32, 24], strides = [1, 1, 1, 1]} : vector<3x3x32x24xf32> to vector<1x1x32x24xf32>
    %23 = vector.shape_cast %22 : vector<1x1x32x24xf32> to vector<32x24xf32>
    %cst_17 = arith.constant dense<0.000000e+00> : vector<8x24xf32>
    %24 = tpu.matmul %21, %23, %cst_17 {dimension_numbers = #tpu.dot_dimension_numbers<[1], [0], [0], [1], [0, 0, 1, 1], [], []>} : vector<8x32xf32>, vector<32x24xf32>, vector<8x24xf32> -> vector<8x24xf32>
    %25 = arith.addf %20, %24 : vector<8x24xf32>
    %26 = vector.extract_strided_slice %3 {offsets = [1, 0], sizes = [8, 32], strides = [1, 1]} : vector<10x32xf32> to vector<8x32xf32>
    %27 = vector.extract_strided_slice %6 {offsets = [1, 1, 0, 0], sizes = [1, 1, 32, 24], strides = [1, 1, 1, 1]} : vector<3x3x32x24xf32> to vector<1x1x32x24xf32>
    %28 = vector.shape_cast %27 : vector<1x1x32x24xf32> to vector<32x24xf32>
    %cst_18 = arith.constant dense<0.000000e+00> : vector<8x24xf32>
    %29 = tpu.matmul %26, %28, %cst_18 {dimension_numbers = #tpu.dot_dimension_numbers<[1], [0], [0], [1], [0, 0, 1, 1], [], []>} : vector<8x32xf32>, vector<32x24xf32>, vector<8x24xf32> -> vector<8x24xf32>
    %30 = arith.addf %25, %29 : vector<8x24xf32>
    %31 = vector.extract_strided_slice %3 {offsets = [2, 0], sizes = [8, 32], strides = [1, 1]} : vector<10x32xf32> to vector<8x32xf32>
    %32 = vector.extract_strided_slice %6 {offsets = [1, 2, 0, 0], sizes = [1, 1, 32, 24], strides = [1, 1, 1, 1]} : vector<3x3x32x24xf32> to vector<1x1x32x24xf32>
    %33 = vector.shape_cast %32 : vector<1x1x32x24xf32> to vector<32x24xf32>
    %cst_19 = arith.constant dense<0.000000e+00> : vector<8x24xf32>
    %34 = tpu.matmul %31, %33, %cst_19 {dimension_numbers = #tpu.dot_dimension_numbers<[1], [0], [0], [1], [0, 0, 1, 1], [], []>} : vector<8x32xf32>, vector<32x24xf32>, vector<8x24xf32> -> vector<8x24xf32>
    %35 = arith.addf %30, %34 : vector<8x24xf32>
    %36 = vector.extract_strided_slice %5 {offsets = [0, 0], sizes = [8, 32], strides = [1, 1]} : vector<10x32xf32> to vector<8x32xf32>
    %37 = vector.extract_strided_slice %6 {offsets = [2, 0, 0, 0], sizes = [1, 1, 32, 24], strides = [1, 1, 1, 1]} : vector<3x3x32x24xf32> to vector<1x1x32x24xf32>
    %38 = vector.shape_cast %37 : vector<1x1x32x24xf32> to vector<32x24xf32>
    %cst_20 = arith.constant dense<0.000000e+00> : vector<8x24xf32>
    %39 = tpu.matmul %36, %38, %cst_20 {dimension_numbers = #tpu.dot_dimension_numbers<[1], [0], [0], [1], [0, 0, 1, 1], [], []>} : vector<8x32xf32>, vector<32x24xf32>, vector<8x24xf32> -> vector<8x24xf32>
    %40 = arith.addf %35, %39 : vector<8x24xf32>
    %41 = vector.extract_strided_slice %5 {offsets = [1, 0], sizes = [8, 32], strides = [1, 1]} : vector<10x32xf32> to vector<8x32xf32>
    %42 = vector.extract_strided_slice %6 {offsets = [2, 1, 0, 0], sizes = [1, 1, 32, 24], strides = [1, 1, 1, 1]} : vector<3x3x32x24xf32> to vector<1x1x32x24xf32>
    %43 = vector.shape_cast %42 : vector<1x1x32x24xf32> to vector<32x24xf32>
    %cst_21 = arith.constant dense<0.000000e+00> : vector<8x24xf32>
    %44 = tpu.matmul %41, %43, %cst_21 {dimension_numbers = #tpu.dot_dimension_numbers<[1], [0], [0], [1], [0, 0, 1, 1], [], []>} : vector<8x32xf32>, vector<32x24xf32>, vector<8x24xf32> -> vector<8x24xf32>
    %45 = arith.addf %40, %44 : vector<8x24xf32>
    %46 = vector.extract_strided_slice %5 {offsets = [2, 0], sizes = [8, 32], strides = [1, 1]} : vector<10x32xf32> to vector<8x32xf32>
    %47 = vector.extract_strided_slice %6 {offsets = [2, 2, 0, 0], sizes = [1, 1, 32, 24], strides = [1, 1, 1, 1]} : vector<3x3x32x24xf32> to vector<1x1x32x24xf32>
    %48 = vector.shape_cast %47 : vector<1x1x32x24xf32> to vector<32x24xf32>
    %cst_22 = arith.constant dense<0.000000e+00> : vector<8x24xf32>
    %49 = tpu.matmul %46, %48, %cst_22 {dimension_numbers = #tpu.dot_dimension_numbers<[1], [0], [0], [1], [0, 0, 1, 1], [], []>} : vector<8x32xf32>, vector<32x24xf32>, vector<8x24xf32> -> vector<8x24xf32>
    %50 = arith.addf %45, %49 : vector<8x24xf32>
    %c0_23 = arith.constant 0 : index
    %c0_24 = arith.constant 0 : index
    %c0_25 = arith.constant 0 : index
    %c0_26 = arith.constant 0 : index
    %51 = vector.load %arg6[%c0_23, %c0_24, %c0_25, %c0_26] : memref<1x1x8x24xf32, #tpu.memory_space<vmem>>, vector<1x1x8x24xf32>
    %52 = vector.shape_cast %51 : vector<1x1x8x24xf32> to vector<8x24xf32>
    %53 = vector.shape_cast %50 : vector<8x24xf32> to vector<1x1x8x24xf32>
    tpu.vector_store %arg6[%c0_23, %c0_24, %c0_25, %c0_26], %53 {strides = array<i32>} : memref<1x1x8x24xf32, #tpu.memory_space<vmem>>, vector<1x1x8x24xf32>,
    return
  }
  func.func @transform_0(%arg0: i32, %arg1: i32) -> (i32, i32, i32, i32) {
    %c0_i32 = arith.constant 0 : i32
    %0 = arith.addi %arg1, %c0_i32 : i32
    %c0_i32_0 = arith.constant 0 : i32
    %c0_i32_1 = arith.constant 0 : i32
    %c0_i32_2 = arith.constant 0 : i32
    return %arg0, %0, %c0_i32_0, %c0_i32_1 : i32, i32, i32, i32
  }
  func.func @transform_1(%arg0: i32, %arg1: i32) -> (i32, i32, i32, i32) {
    %c1_i32 = arith.constant 1 : i32
    %0 = arith.addi %arg1, %c1_i32 : i32
    %c0_i32 = arith.constant 0 : i32
    %c0_i32_0 = arith.constant 0 : i32
    %c0_i32_1 = arith.constant 0 : i32
    return %arg0, %0, %c0_i32, %c0_i32_0 : i32, i32, i32, i32
  }
  func.func @transform_2(%arg0: i32, %arg1: i32) -> (i32, i32, i32, i32) {
    %c2_i32 = arith.constant 2 : i32
    %0 = arith.addi %arg1, %c2_i32 : i32
    %c0_i32 = arith.constant 0 : i32
    %c0_i32_0 = arith.constant 0 : i32
    %c0_i32_1 = arith.constant 0 : i32
    return %arg0, %0, %c0_i32, %c0_i32_0 : i32, i32, i32, i32
  }
  func.func @transform_3(%arg0: i32, %arg1: i32) -> (i32, i32, i32, i32) {
    %c0_i32 = arith.constant 0 : i32
    %c0_i32_0 = arith.constant 0 : i32
    %c0_i32_1 = arith.constant 0 : i32
    %c0_i32_2 = arith.constant 0 : i32
    %c0_i32_3 = arith.constant 0 : i32
    return %c0_i32, %c0_i32_0, %c0_i32_1, %c0_i32_2 : i32, i32, i32, i32
  }
  func.func @transform_4(%arg0: i32, %arg1: i32) -> (i32, i32, i32, i32) {
    %c0_i32 = arith.constant 0 : i32
    %c0_i32_0 = arith.constant 0 : i32
    %c0_i32_1 = arith.constant 0 : i32
    return %arg0, %arg1, %c0_i32, %c0_i32_0 : i32, i32, i32, i32
  }
}

module attributes {stable_mosaic.version = 11 : i64} {
  func.func @_conv3x3_row_kernel(%arg0: i32, %arg1: i32, %arg2: memref<1x1x10x16xf32, #tpu.memory_space<vmem>>, %arg3: memref<1x1x10x16xf32, #tpu.memory_space<vmem>>, %arg4: memref<1x1x10x16xf32, #tpu.memory_space<vmem>>, %arg5: memref<3x3x16x32xf32, #tpu.memory_space<vmem>>, %arg6: memref<1x1x8x32xf32, #tpu.memory_space<vmem>>) attributes {dimension_semantics = [#tpu.dimension_semantics<parallel>, #tpu.dimension_semantics<parallel>], iteration_bounds = array<i64: 2, 8>, scalar_prefetch = 0 : i64, scratch_operands = 0 : i64, tpu.core_type = #tpu.core_type<tc>, window_params = [{transform_indices = @transform_0, window_bounds = array<i64: 1, 1, 10, 16>}, {transform_indices = @transform_1, window_bounds = array<i64: 1, 1, 10, 16>}, {transform_indices = @transform_2, window_bounds = array<i64: 1, 1, 10, 16>}, {pipeline_mode = #tpu.pipeline_mode<synchronous>, transform_indices = @transform_3, window_bounds = array<i64: 3, 3, 16, 32>}, {transform_indices = @transform_4, window_bounds = array<i64: 1, 1, 8, 32>}]} {
    %c0 = arith.constant 0 : index
    %c0_0 = arith.constant 0 : index
    %c0_1 = arith.constant 0 : index
    %c0_2 = arith.constant 0 : index
    %0 = vector.load %arg2[%c0, %c0_0, %c0_1, %c0_2] : memref<1x1x10x16xf32, #tpu.memory_space<vmem>>, vector<1x1x10x16xf32>
    %1 = vector.shape_cast %0 : vector<1x1x10x16xf32> to vector<10x16xf32>
    %c0_3 = arith.constant 0 : index
    %c0_4 = arith.constant 0 : index
    %c0_5 = arith.constant 0 : index
    %c0_6 = arith.constant 0 : index
    %2 = vector.load %arg3[%c0_3, %c0_4, %c0_5, %c0_6] : memref<1x1x10x16xf32, #tpu.memory_space<vmem>>, vector<1x1x10x16xf32>
    %3 = vector.shape_cast %2 : vector<1x1x10x16xf32> to vector<10x16xf32>
    %c0_7 = arith.constant 0 : index
    %c0_8 = arith.constant 0 : index
    %c0_9 = arith.constant 0 : index
    %c0_10 = arith.constant 0 : index
    %4 = vector.load %arg4[%c0_7, %c0_8, %c0_9, %c0_10] : memref<1x1x10x16xf32, #tpu.memory_space<vmem>>, vector<1x1x10x16xf32>
    %5 = vector.shape_cast %4 : vector<1x1x10x16xf32> to vector<10x16xf32>
    %c0_11 = arith.constant 0 : index
    %c0_12 = arith.constant 0 : index
    %c0_13 = arith.constant 0 : index
    %c0_14 = arith.constant 0 : index
    %6 = vector.load %arg5[%c0_11, %c0_12, %c0_13, %c0_14] : memref<3x3x16x32xf32, #tpu.memory_space<vmem>>, vector<3x3x16x32xf32>
    %7 = vector.extract_strided_slice %1 {offsets = [0, 0], sizes = [8, 16], strides = [1, 1]} : vector<10x16xf32> to vector<8x16xf32>
    %8 = vector.extract_strided_slice %6 {offsets = [0, 0, 0, 0], sizes = [1, 1, 16, 32], strides = [1, 1, 1, 1]} : vector<3x3x16x32xf32> to vector<1x1x16x32xf32>
    %9 = vector.shape_cast %8 : vector<1x1x16x32xf32> to vector<16x32xf32>
    %cst = arith.constant dense<0.000000e+00> : vector<8x32xf32>
    %10 = tpu.matmul %7, %9, %cst {dimension_numbers = #tpu.dot_dimension_numbers<[1], [0], [0], [1], [0, 0, 1, 1], [], []>} : vector<8x16xf32>, vector<16x32xf32>, vector<8x32xf32> -> vector<8x32xf32>
    %11 = vector.extract_strided_slice %1 {offsets = [1, 0], sizes = [8, 16], strides = [1, 1]} : vector<10x16xf32> to vector<8x16xf32>
    %12 = vector.extract_strided_slice %6 {offsets = [0, 1, 0, 0], sizes = [1, 1, 16, 32], strides = [1, 1, 1, 1]} : vector<3x3x16x32xf32> to vector<1x1x16x32xf32>
    %13 = vector.shape_cast %12 : vector<1x1x16x32xf32> to vector<16x32xf32>
    %cst_15 = arith.constant dense<0.000000e+00> : vector<8x32xf32>
    %14 = tpu.matmul %11, %13, %cst_15 {dimension_numbers = #tpu.dot_dimension_numbers<[1], [0], [0], [1], [0, 0, 1, 1], [], []>} : vector<8x16xf32>, vector<16x32xf32>, vector<8x32xf32> -> vector<8x32xf32>
    %15 = arith.addf %10, %14 : vector<8x32xf32>
    %16 = vector.extract_strided_slice %1 {offsets = [2, 0], sizes = [8, 16], strides = [1, 1]} : vector<10x16xf32> to vector<8x16xf32>
    %17 = vector.extract_strided_slice %6 {offsets = [0, 2, 0, 0], sizes = [1, 1, 16, 32], strides = [1, 1, 1, 1]} : vector<3x3x16x32xf32> to vector<1x1x16x32xf32>
    %18 = vector.shape_cast %17 : vector<1x1x16x32xf32> to vector<16x32xf32>
    %cst_16 = arith.constant dense<0.000000e+00> : vector<8x32xf32>
    %19 = tpu.matmul %16, %18, %cst_16 {dimension_numbers = #tpu.dot_dimension_numbers<[1], [0], [0], [1], [0, 0, 1, 1], [], []>} : vector<8x16xf32>, vector<16x32xf32>, vector<8x32xf32> -> vector<8x32xf32>
    %20 = arith.addf %15, %19 : vector<8x32xf32>
    %21 = vector.extract_strided_slice %3 {offsets = [0, 0], sizes = [8, 16], strides = [1, 1]} : vector<10x16xf32> to vector<8x16xf32>
    %22 = vector.extract_strided_slice %6 {offsets = [1, 0, 0, 0], sizes = [1, 1, 16, 32], strides = [1, 1, 1, 1]} : vector<3x3x16x32xf32> to vector<1x1x16x32xf32>
    %23 = vector.shape_cast %22 : vector<1x1x16x32xf32> to vector<16x32xf32>
    %cst_17 = arith.constant dense<0.000000e+00> : vector<8x32xf32>
    %24 = tpu.matmul %21, %23, %cst_17 {dimension_numbers = #tpu.dot_dimension_numbers<[1], [0], [0], [1], [0, 0, 1, 1], [], []>} : vector<8x16xf32>, vector<16x32xf32>, vector<8x32xf32> -> vector<8x32xf32>
    %25 = arith.addf %20, %24 : vector<8x32xf32>
    %26 = vector.extract_strided_slice %3 {offsets = [1, 0], sizes = [8, 16], strides = [1, 1]} : vector<10x16xf32> to vector<8x16xf32>
    %27 = vector.extract_strided_slice %6 {offsets = [1, 1, 0, 0], sizes = [1, 1, 16, 32], strides = [1, 1, 1, 1]} : vector<3x3x16x32xf32> to vector<1x1x16x32xf32>
    %28 = vector.shape_cast %27 : vector<1x1x16x32xf32> to vector<16x32xf32>
    %cst_18 = arith.constant dense<0.000000e+00> : vector<8x32xf32>
    %29 = tpu.matmul %26, %28, %cst_18 {dimension_numbers = #tpu.dot_dimension_numbers<[1], [0], [0], [1], [0, 0, 1, 1], [], []>} : vector<8x16xf32>, vector<16x32xf32>, vector<8x32xf32> -> vector<8x32xf32>
    %30 = arith.addf %25, %29 : vector<8x32xf32>
    %31 = vector.extract_strided_slice %3 {offsets = [2, 0], sizes = [8, 16], strides = [1, 1]} : vector<10x16xf32> to vector<8x16xf32>
    %32 = vector.extract_strided_slice %6 {offsets = [1, 2, 0, 0], sizes = [1, 1, 16, 32], strides = [1, 1, 1, 1]} : vector<3x3x16x32xf32> to vector<1x1x16x32xf32>
    %33 = vector.shape_cast %32 : vector<1x1x16x32xf32> to vector<16x32xf32>
    %cst_19 = arith.constant dense<0.000000e+00> : vector<8x32xf32>
    %34 = tpu.matmul %31, %33, %cst_19 {dimension_numbers = #tpu.dot_dimension_numbers<[1], [0], [0], [1], [0, 0, 1, 1], [], []>} : vector<8x16xf32>, vector<16x32xf32>, vector<8x32xf32> -> vector<8x32xf32>
    %35 = arith.addf %30, %34 : vector<8x32xf32>
    %36 = vector.extract_strided_slice %5 {offsets = [0, 0], sizes = [8, 16], strides = [1, 1]} : vector<10x16xf32> to vector<8x16xf32>
    %37 = vector.extract_strided_slice %6 {offsets = [2, 0, 0, 0], sizes = [1, 1, 16, 32], strides = [1, 1, 1, 1]} : vector<3x3x16x32xf32> to vector<1x1x16x32xf32>
    %38 = vector.shape_cast %37 : vector<1x1x16x32xf32> to vector<16x32xf32>
    %cst_20 = arith.constant dense<0.000000e+00> : vector<8x32xf32>
    %39 = tpu.matmul %36, %38, %cst_20 {dimension_numbers = #tpu.dot_dimension_numbers<[1], [0], [0], [1], [0, 0, 1, 1], [], []>} : vector<8x16xf32>, vector<16x32xf32>, vector<8x32xf32> -> vector<8x32xf32>
    %40 = arith.addf %35, %39 : vector<8x32xf32>
    %41 = vector.extract_strided_slice %5 {offsets = [1, 0], sizes = [8, 16], strides = [1, 1]} : vector<10x16xf32> to vector<8x16xf32>
    %42 = vector.extract_strided_slice %6 {offsets = [2, 1, 0, 0], sizes = [1, 1, 16, 32], strides = [1, 1, 1, 1]} : vector<3x3x16x32xf32> to vector<1x1x16x32xf32>
    %43 = vector.shape_cast %42 : vector<1x1x16x32xf32> to vector<16x32xf32>
    %cst_21 = arith.constant dense<0.000000e+00> : vector<8x32xf32>
    %44 = tpu.matmul %41, %43, %cst_21 {dimension_numbers = #tpu.dot_dimension_numbers<[1], [0], [0], [1], [0, 0, 1, 1], [], []>} : vector<8x16xf32>, vector<16x32xf32>, vector<8x32xf32> -> vector<8x32xf32>
    %45 = arith.addf %40, %44 : vector<8x32xf32>
    %46 = vector.extract_strided_slice %5 {offsets = [2, 0], sizes = [8, 16], strides = [1, 1]} : vector<10x16xf32> to vector<8x16xf32>
    %47 = vector.extract_strided_slice %6 {offsets = [2, 2, 0, 0], sizes = [1, 1, 16, 32], strides = [1, 1, 1, 1]} : vector<3x3x16x32xf32> to vector<1x1x16x32xf32>
    %48 = vector.shape_cast %47 : vector<1x1x16x32xf32> to vector<16x32xf32>
    %cst_22 = arith.constant dense<0.000000e+00> : vector<8x32xf32>
    %49 = tpu.matmul %46, %48, %cst_22 {dimension_numbers = #tpu.dot_dimension_numbers<[1], [0], [0], [1], [0, 0, 1, 1], [], []>} : vector<8x16xf32>, vector<16x32xf32>, vector<8x32xf32> -> vector<8x32xf32>
    %50 = arith.addf %45, %49 : vector<8x32xf32>
    %c0_23 = arith.constant 0 : index
    %c0_24 = arith.constant 0 : index
    %c0_25 = arith.constant 0 : index
    %c0_26 = arith.constant 0 : index
    %51 = vector.load %arg6[%c0_23, %c0_24, %c0_25, %c0_26] : memref<1x1x8x32xf32, #tpu.memory_space<vmem>>, vector<1x1x8x32xf32>
    %52 = vector.shape_cast %51 : vector<1x1x8x32xf32> to vector<8x32xf32>
    %53 = vector.shape_cast %50 : vector<8x32xf32> to vector<1x1x8x32xf32>
    tpu.vector_store %arg6[%c0_23, %c0_24, %c0_25, %c0_26], %53 {strides = array<i32>} : memref<1x1x8x32xf32, #tpu.memory_space<vmem>>, vector<1x1x8x32xf32>,
    return
  }
  func.func @transform_0(%arg0: i32, %arg1: i32) -> (i32, i32, i32, i32) {
    %c0_i32 = arith.constant 0 : i32
    %0 = arith.addi %arg1, %c0_i32 : i32
    %c0_i32_0 = arith.constant 0 : i32
    %c0_i32_1 = arith.constant 0 : i32
    %c0_i32_2 = arith.constant 0 : i32
    return %arg0, %0, %c0_i32_0, %c0_i32_1 : i32, i32, i32, i32
  }
  func.func @transform_1(%arg0: i32, %arg1: i32) -> (i32, i32, i32, i32) {
    %c1_i32 = arith.constant 1 : i32
    %0 = arith.addi %arg1, %c1_i32 : i32
    %c0_i32 = arith.constant 0 : i32
    %c0_i32_0 = arith.constant 0 : i32
    %c0_i32_1 = arith.constant 0 : i32
    return %arg0, %0, %c0_i32, %c0_i32_0 : i32, i32, i32, i32
  }
  func.func @transform_2(%arg0: i32, %arg1: i32) -> (i32, i32, i32, i32) {
    %c2_i32 = arith.constant 2 : i32
    %0 = arith.addi %arg1, %c2_i32 : i32
    %c0_i32 = arith.constant 0 : i32
    %c0_i32_0 = arith.constant 0 : i32
    %c0_i32_1 = arith.constant 0 : i32
    return %arg0, %0, %c0_i32, %c0_i32_0 : i32, i32, i32, i32
  }
  func.func @transform_3(%arg0: i32, %arg1: i32) -> (i32, i32, i32, i32) {
    %c0_i32 = arith.constant 0 : i32
    %c0_i32_0 = arith.constant 0 : i32
    %c0_i32_1 = arith.constant 0 : i32
    %c0_i32_2 = arith.constant 0 : i32
    %c0_i32_3 = arith.constant 0 : i32
    return %c0_i32, %c0_i32_0, %c0_i32_1, %c0_i32_2 : i32, i32, i32, i32
  }
  func.func @transform_4(%arg0: i32, %arg1: i32) -> (i32, i32, i32, i32) {
    %c0_i32 = arith.constant 0 : i32
    %c0_i32_0 = arith.constant 0 : i32
    %c0_i32_1 = arith.constant 0 : i32
    return %arg0, %arg1, %c0_i32, %c0_i32_0 : i32, i32, i32, i32
  }
}

</mosaic_0001>

<bundles_post_ra>
// kernel: tattn_forward.3
= control target key start
LH: loop header
LB: loop body
LE: loop exit
PB: predicated region body
PF: predicated region fallthrough
CT: control target
= control target key end

     0   :  { %s1520_s15 = smov 0   ;;  %s1522_s16 = smov 0   ;;  %s1789_s0 = inlined_call_operand.vmem [shape: f32[2,10,10,32], index: 0, kind: input, shape index: {}, may-alias: {0,1,2}]   ;;  %s1790_s1 = inlined_call_operand.vmem [shape: f32[2,10,10,32], index: 1, kind: input, shape index: {}, may-alias: {0,1,2}]   ;;  %s1791_s2 = inlined_call_operand.vmem [shape: f32[2,10,10,32], index: 2, kind: input, shape index: {}, may-alias: {0,1,2}]   ;;  %s1792_s3 = inlined_call_operand.vmem [shape: f32[3,3,32,24], index: 3, kind: input, shape index: {}]   ;;  %s1793_s4 = inlined_call_operand.vmem [shape: f32[2,8,8,24], index: 4, kind: output, shape index: {}]  }
   0x1   :  { %s1524_s17 = smov 0   ;;  %s1526_s18 = smov 0  }
   0x2   :  { %s1528_s19 = smov 0  }
   0x3 LB: > { %s23_s20 = sadd.s32 1, %s1482_s17  ;;  %s26_s21 = sadd.s32 1, %s1486_s18  ;;  %s1490_s19 = sphi %s1528_s19, %s14_s19   ;;  %s1486_s18 = sphi %s1526_s18, %s1799_s18   ;;  %s1482_s17 = sphi %s1524_s17, %s1798_s17   ;;  %s1478_s16 = sphi %s1522_s16, %s1797_s16   ;;  %s1474_s15 = sphi %s1520_s15, %s1796_s15  }
   0x4   : > { %p24_p0 = scmp.ge.s32.totalorder %s23_s20, 8  ;;  %p1175_p1 = scmp.ge.s32.totalorder %s1490_s19, 1 }
   0x5   : > { %p222_p2 = scmp.lt.s32.totalorder %s1490_s19, 17 }
   0x6   : > { %s1801_s20 = smov (%p24_p0, %s23_s20), 0  ;;  %s1803_s21 = smov (!%p24_p0, %s26_s21), %s1486_s18 }
   0x7   : > { %p223_p3 = pnand %p1175_p1, %p222_p2  ;;  %p28_p4 = scmp.ge.s32.totalorder %s1803_s21, 2 }
   0x8   : > { %v336_v0 = vld [vmem:[%s1792_s3 + $0x80] sm:$0xff] (!%p223_p3)  ;;  %v337_v1 = vld [vmem:[%s1792_s3 + $0x88] sm:$0xff] (!%p223_p3)  ;;  %v1492_v3 = vmov (!%p223_p3), 0.0|0.0   ;;  %v338_v6 = vld [vmem:[%s1792_s3 + $0x90] sm:$0xff] (!%p223_p3)  ;;  %p275_p5 = scmp.lt.s32.totalorder (!%p223_p3), %s1478_s16, 1  ;;  %p277_p6 = scmp.lt.s32.totalorder (!%p223_p3), %s1474_s15, 9 }
   0x9   : > { %s1805_s21 = smov (%p28_p4, %s1803_s21), 0  ;;  %226 = sbr.rel (%p223_p3) target bundleno = 276 (0x114), region = 36 }
   0xa   : > { %v324_v2 = vld [vmem:[%s1792_s3 + $0x20] sm:$0xff] (!%p223_p3)  ;;  %1363 = vmatprep.subr.bf16.mxu0 (!%p223_p3), %v1492_v3  ;;  %1339 = vmatprep.subr.bf16.mxu1 (!%p223_p3), %v1492_v3  ;;  %v1364_v4 = vpack.c.bf16 (!%p223_p3), %v337_v1, %v336_v0  ;;  %v325_v5 = vld [vmem:[%s1792_s3 + $0x28] sm:$0xff] (!%p223_p3)  ;;  %v339_v7 = vld [vmem:[%s1792_s3 + $0x98] sm:$0xff] (!%p223_p3)  ;;  %vm1493_vm0 = vmmov (!%p223_p3), 0   ;;  %v1494_v11 = vmov (!%p223_p3), 0.0   ;;  %s284_s12 = sadd.s32 (!%p223_p3), 1, %s1474_s15 }
   0xb   : > { %v1340_v8 = vpack.c.bf16 (!%p223_p3), %v325_v5, %v324_v2  ;;  %v326_v9 = vld [vmem:[%s1792_s3 + $0x30] sm:$0xff] (!%p223_p3)  ;;  %v327_v10 = vld [vmem:[%s1792_s3 + $0x38] sm:$0xff] (!%p223_p3)  ;;  %1248 = vmatprep.mubr.msk.f32.mxu1 (!%p223_p3), %vm1493_vm0, %v1494_v11  ;;  %1292 = vmatprep.mubr.msk.f32.mxu0 (!%p223_p3), %vm1493_vm0, %v1494_v11  ;;  %v1367_v12 = vpack.c.bf16 (!%p223_p3), %v339_v7, %v338_v6  ;;  %p1598_p7 = scmp.lt.s32.totalorder (!%p223_p3), %s284_s12, 9  ;;  %v320_v14 = vld [vmem:[%s1792_s3] sm:$0xff] (!%p223_p3)  ;;  %s295_s7 = sadd.s32 (!%p223_p3), 2, %s1474_s15  ;;  %vm358_vm1 = vcmask (!%p223_p3), 1046528  }
   0xc   : > { %1365 = vmatpush3.bf16.msra.mxu0 (!%p223_p3), %v1364_v4  ;;  %v1343_v13 = vpack.c.bf16 (!%p223_p3), %v327_v10, %v326_v9  ;;  %v321_v15 = vld [vmem:[%s1792_s3 + $0x8] sm:$0xff] (!%p223_p3)  ;;  %vm362_vm2 = vcmask (!%p223_p3), 261120   ;;  %v322_v21 = vld [vmem:[%s1792_s3 + $0x10] sm:$0xff] (!%p223_p3)  ;;  %v323_v22 = vld [vmem:[%s1792_s3 + $0x18] sm:$0xff] (!%p223_p3)  ;;  %p1633_p8 = scmp.lt.s32.totalorder (!%p223_p3), %s295_s7, 9  ;;  %vm507_vm3 = vcmask (!%p223_p3), 1045504  }
   0xd   : > { %1341 = vmatpush3.bf16.msra.mxu1 (!%p223_p3), %v1340_v8  ;;  %1366 = vmatprep.subr.bf16.mxu0 (!%p223_p3), %v1492_v3  ;;  %v1346_v20 = vpack.c.bf16 (!%p223_p3), %v321_v15, %v320_v14  ;;  %v340_v24 = vld [vmem:[%s1792_s3 + $0xa0] sm:$0xff] (!%p223_p3)  ;;  %v341_v25 = vld [vmem:[%s1792_s3 + $0xa8] sm:$0xff] (!%p223_p3)  ;;  %v1349_v26 = vpack.c.bf16 (!%p223_p3), %v323_v22, %v322_v21  ;;  %v342_v34 = vld [vmem:[%s1792_s3 + $0xb0] sm:$0xff] (!%p223_p3)  ;;  %p308_p9 = scmp.lt.s32.totalorder (!%p223_p3), %s1474_s15, 7  ;;  %vm1038_vm4 = vcmask (!%p223_p3), 195584  }
   0xe   : > { %1342 = vmatprep.subr.bf16.mxu1 (!%p223_p3), %v1492_v3  ;;  %v328_v27 = vld [vmem:[%s1792_s3 + $0x40] sm:$0xff] (!%p223_p3)  ;;  %v329_v30 = vld [vmem:[%s1792_s3 + $0x48] sm:$0xff] (!%p223_p3)  ;;  %v1370_v33 = vpack.c.bf16 (!%p223_p3), %v341_v25, %v340_v24  ;;  %v343_v35 = vld [vmem:[%s1792_s3 + $0xb8] sm:$0xff] (!%p223_p3) }
   0xf   : > { %v1352_v37 = vpack.c.bf16 (!%p223_p3), %v329_v30, %v328_v27  ;;  %v330_v38 = vld [vmem:[%s1792_s3 + $0x50] sm:$0xff] (!%p223_p3)  ;;  %v331_v39 = vld [vmem:[%s1792_s3 + $0x58] sm:$0xff] (!%p223_p3)  ;;  %v1373_v41 = vpack.c.bf16 (!%p223_p3), %v343_v35, %v342_v34  ;;  %v344_v43 = vld [vmem:[%s1792_s3 + $0xc0] sm:$0xff] (!%p223_p3) }
  0x10   : > { %s1807_s16 = smov (!%p275_p5, %s1478_s16), 1  ;;  %1368 = vmatpush3.bf16.msra.mxu0 %v1367_v12  ;;  %s1809_s12 = smov (!%p1598_p7, %s284_s12), 9  ;;  %v345_v44 = vld [vmem:[%s1792_s3 + $0xc8] sm:$0xff]  ;;  %v1355_v46 = vpack.c.bf16 %v331_v39, %v330_v38  ;;  %v332_v48 = vld [vmem:[%s1792_s3 + $0x60] sm:$0xff]  ;;  %v346_v52 = vld [vmem:[%s1792_s3 + $0xd0] sm:$0xff] }
  0x11   : > { %s278_s13 = scalar_select %p277_p6, %s1474_s15, 9  ;;  %1344 = vmatpush3.bf16.msra.mxu1 %v1343_v13  ;;  %1369 = vmatprep.subr.bf16.mxu0 %v1492_v3  ;;  %v333_v49 = vld [vmem:[%s1792_s3 + $0x68] sm:$0xff]  ;;  %v1376_v51 = vpack.c.bf16 %v345_v44, %v344_v43  ;;  %v347_v53 = vld [vmem:[%s1792_s3 + $0xd8] sm:$0xff]  ;;  %v334_v56 = vld [vmem:[%s1792_s3 + $0x70] sm:$0xff] }
  0x12   : > { %s1596_s14 = smul.u32 20, %s1807_s16  ;;  %1345 = vmatprep.subr.bf16.mxu1 %v1492_v3  ;;  %s1178_s8 = sshll.u32 %s1809_s12, 1  ;;  %v1358_v55 = vpack.c.bf16 %v333_v49, %v332_v48  ;;  %v335_v57 = vld [vmem:[%s1792_s3 + $0x78] sm:$0xff]  ;;  %v1379_v58 = vpack.c.bf16 %v347_v53, %v346_v52  ;;  %v348_v59 = vld [vmem:[%s1792_s3 + $0xe0] sm:$0xff]  ;;  %v349_v60 = vld [vmem:[%s1792_s3 + $0xe8] sm:$0xff] }
  0x13   : > { %s1176_s22 = sshll.u32 %s278_s13, 1  ;;  %s1811_s7 = smov (!%p1633_p8, %s295_s7), 9  ;;  %v1361_v61 = vpack.c.bf16 %v335_v57, %v334_v56  ;;  %v1382_v63 = vpack.c.bf16 %v349_v60, %v348_v59  ;;  %v350_v1 = vld [vmem:[%s1792_s3 + $0xf0] sm:$0xff]  ;;  %v351_v2 = vld [vmem:[%s1792_s3 + $0xf8] sm:$0xff]  ;;  %v352_v7 = vld [vmem:[%s1792_s3 + $0x100] sm:$0xff] }
  0x14   : > { %s281_s24 = sadd.s32 %s1596_s14, %s1176_s22  ;;  %s291_s22 = sadd.s32 %s1596_s14, %s1178_s8  ;;  %v1385_v6 = vpack.c.bf16 %v351_v2, %v350_v1  ;;  %v353_v8 = vld [vmem:[%s1792_s3 + $0x108] sm:$0xff]  ;;  %v354_v12 = vld [vmem:[%s1792_s3 + $0x110] sm:$0xff]  ;;  %v355_v13 = vld [vmem:[%s1792_s3 + $0x118] sm:$0xff] }
  0x15   : > { %s1177_s25 = sshll.u32 %s281_s24, 3  ;;  %s1179_s12 = sshll.u32 %s291_s22, 3  ;;  %v1388_v10 = vpack.c.bf16 %v353_v8, %v352_v7 }
  0x16   : > { %s283_s6 = scalar_lea.vmem %s1789_s0, %s1177_s25  ;;  %s293_s30 = scalar_lea.vmem %s1790_s1, %s1179_s12 }
  0x17   : > { %v1615_v16 = vld [vmem:[%s283_s6] sm:$0xff]  ;;  %v1617_v17 = vld [vmem:[%s283_s6 + $0x8] sm:$0x3]  ;;  %s1180_s26 = sshll.u32 %s1811_s7, 1  ;;  %s1813_s15 = smov (!%p308_p9, %s1474_s15), 7 }
  0x18   : > { %v359_v18 = vrot.slane %v1615_v16, 1  ;;  %v360_v19 = vrot.slane %v1617_v17, 1  ;;  %v1652_v28 = vld [vmem:[%s293_s30] sm:$0xff]  ;;  %v317_v29 = vld [vmem:[%s293_s30 + $0x8] sm:$0x3]  ;;  %v509_v45 = vrot.slane %v1617_v17, 2  ;;  %s302_s7 = sadd.s32 %s1596_s14, %s1180_s26 }
  0x19   : > { %v659_v31 = vrot.slane %v1652_v28, 1  ;;  %v660_v32 = vrot.slane %v317_v29, 1  ;;  %v736_v40 = vrot.slane %v317_v29, 2  ;;  %v735_v42 = vrot.slane %v1652_v28, 2  ;;  %s1181_s22 = sshll.u32 %s302_s7, 3  ;;  %s1182_s26 = sshll.u32 %s1807_s16, 3 }
  0x1a   : > { %v361_v23 = vsel %vm358_vm1, %v359_v18, %v360_v19  ;;  %v508_v47 = vrot.slane %v1615_v16, 2  ;;  %s304_s28 = scalar_lea.vmem %s1791_s2, %s1181_s22  ;;  %s311_s27 = sadd.s32 %s1182_s26, %s1813_s15 }
  0x1b   : > { %1249 = vmatmul.mubr.msk.f32.vlgmr.msra.gmra.mrb[0].mxu1 %vm362_vm2, %v361_v23  ;;  %v661_v36 = vsel %vm358_vm1, %v659_v31, %v660_v32  ;;  %v737_v50 = vsel %vm507_vm3, %v735_v42, %v736_v40  ;;  %v318_v62 = vld [vmem:[%s304_s28] sm:$0xff]  ;;  %v319_v0 = vld [vmem:[%s304_s28 + $0x8] sm:$0x3]  ;;  %s1183_s28 = sshll.u32 %s311_s27, 3 }
  0x1c   : > { %1347 = vmatpush3.bf16.msra.mxu1 %v1346_v20  ;;  %1259 = vmatprep.mubr.msk.f32.mxu1 %vm1493_vm0, %v1494_v11  ;;  %v510_v54 = vsel %vm507_vm3, %v508_v47, %v509_v45  ;;  %v886_v4 = vrot.slane %v318_v62, 1  ;;  %v887_v5 = vrot.slane %v319_v0, 1  ;;  %v962_v14 = vrot.slane %v318_v62, 2  ;;  %s313_s7 = scalar_lea.vmem %s1793_s4, %s1183_s28 }
  0x1d   : > { %1348 = vmatprep.subr.bf16.mxu1 %v1492_v3  ;;  %1293 = vmatmul.mubr.msk.f32.vlgmr.msra.gmra.mrb[0].mxu0 %vm362_vm2, %v661_v36  ;;  %v963_v15 = vrot.slane %v319_v0, 2 }
  0x1e   : > { %1371 = vmatpush3.bf16.msra.mxu0 %v1370_v33  ;;  %1303 = vmatprep.mubr.msk.f32.mxu0 %vm1493_vm0, %v1494_v11  ;;  %v888_v9 = vsel %vm358_vm1, %v886_v4, %v887_v5 }
  0x1f   : > { %1372 = vmatprep.subr.bf16.mxu0 %v1492_v3  ;;  %v964_v17 = vsel %vm507_vm3, %v962_v14, %v963_v15 }
  0x20   : > { %1350 = vmatpush3.bf16.msra.mxu1 %v1349_v26 }
  0x21   : > { %1351 = vmatprep.subr.bf16.mxu1 %v1492_v3 }
  0x22   : > { %1374 = vmatpush3.bf16.msra.mxu0 %v1373_v41 }
  0x23   : > { %1260 = vmatmul.mubr.msk.f32.vlgmr.msra.gmra.mrb[0].mxu1 %vm362_vm2, %v1615_v16  ;;  %1375 = vmatprep.subr.bf16.mxu0 %v1492_v3  ;;  %v1391_v16 = vpack.c.bf16 %v355_v13, %v354_v12 }
  0x24   : > { %1353 = vmatpush3.bf16.msra.mxu1 %v1352_v37  ;;  %1270 = vmatprep.mubr.msk.f32.mxu1 %vm1493_vm0, %v1494_v11 }
  0x25   : > { %1354 = vmatprep.subr.bf16.mxu1 %v1492_v3  ;;  %1304 = vmatmul.mubr.msk.f32.vlgmr.msra.gmra.mrb[0].mxu0 %vm362_vm2, %v737_v50 }
  0x26   : > { %1377 = vmatpush3.bf16.msra.mxu0 %v1376_v51  ;;  %1314 = vmatprep.mubr.msk.f32.mxu0 %vm1493_vm0, %v1494_v11 }
  0x27   : > { %1378 = vmatprep.subr.bf16.mxu0 %v1492_v3 }
  0x28   : > { %1356 = vmatpush3.bf16.msra.mxu1 %v1355_v46 }
  0x29   : > { %1357 = vmatprep.subr.bf16.mxu1 %v1492_v3 }
  0x2a   : > { %1380 = vmatpush3.bf16.msra.mxu0 %v1379_v58 }
  0x2b   : > { %1271 = vmatmul.mubr.msk.f32.vlgmr.msra.gmra.mrb[0].mxu1 %vm362_vm2, %v510_v54  ;;  %1381 = vmatprep.subr.bf16.mxu0 %v1492_v3 }
  0x2c   : > { %1359 = vmatpush3.bf16.msra.mxu1 %v1358_v55  ;;  %1281 = vmatprep.mubr.msk.f32.mxu1 %vm1493_vm0, %v1494_v11 }
  0x2d   : > { %1360 = vmatprep.subr.bf16.mxu1 %v1492_v3  ;;  %1315 = vmatmul.mubr.msk.f32.vlgmr.msra.gmra.mrb[0].mxu0 %vm362_vm2, %v318_v62 }
  0x2e   : > { %1383 = vmatpush3.bf16.msra.mxu0 %v1382_v63  ;;  %1325 = vmatprep.mubr.msk.f32.mxu0 %vm1493_vm0, %v1494_v11 }
  0x2f   : > { %1384 = vmatprep.subr.bf16.mxu0 %v1492_v3 }
  0x30   : > { %1362 = vmatpush3.bf16.msra.mxu1 %v1361_v61 }
  0x32   : > { %1386 = vmatpush3.bf16.msra.mxu0 %v1385_v6 }
  0x33   : > { %1282 = vmatmul.mubr.msk.f32.vlgmr.msra.gmra.mrb[0].mxu1 %vm362_vm2, %v1652_v28  ;;  %1387 = vmatprep.subr.bf16.mxu0 %v1492_v3 }
  0x35   : > { %1326 = vmatmul.mubr.msk.f32.vlgmr.msra.gmra.mrb[0].mxu0 %vm362_vm2, %v888_v9 }
  0x36   : > { %1389 = vmatpush3.bf16.msra.mxu0 %v1388_v10  ;;  %1336 = vmatprep.mubr.msk.f32.mxu0 %vm1493_vm0, %v1494_v11 }
  0x37   : > { %1390 = vmatprep.subr.bf16.mxu0 %v1492_v3 }
  0x3a   : > { %1392 = vmatpush3.bf16.msra.mxu0 %v1391_v16 }
  0x3d   : > { %1337 = vmatmul.mubr.msk.f32.vlgmr.msra.gmra.mrb[0].mxu0 %vm362_vm2, %v964_v17 }
 0x106   : > { %v653_v18 = vpop.f32.mrb[0].mxu1 }
 0x107   : > { %v1283_v19 = vpop.f32.mrb[1].mxu1 }
 0x110   : > { %v1033_v20 = vpop.f32.mrb[0].mxu0 }
 0x111   : > { %v1393_v11 = vadd.f32 %v1033_v20, %v653_v18  ;;  %v1338_v3 = vpop.f32.mrb[1].mxu0 }
 0x113   : > { %1039 = vst.msk [vmem:[%s313_s7] sm:$0xff] %vm1038_vm4, %v1393_v11 }
 0x114 PF: > { %s14_s19 = sadd.s32 1, %s1490_s19   ;;  %s1796_s15 = smov %s1482_s17 }
 0x115   : > { %p11_p10 = scmp.ge.s32.totalorder %s14_s19, 18   ;;  %s1797_s16 = smov %s1486_s18 }
 0x116   : > { %s1798_s17 = smov %s1801_s20  ;;  %s1799_s18 = smov %s1805_s21 }
 0x117   :  { %13 = sbr.rel (!%p11_p10) target bundleno = 3 (0x3), region = 72 }

// kernel: tattn_forward.5
= control target key start
LH: loop header
LB: loop body
LE: loop exit
PB: predicated region body
PF: predicated region fallthrough
CT: control target
= control target key end

     0   :  { %9 = vsyncpa [#allocation3], 0  ;;  %s1763_s0 = inlined_call_operand.vmem [shape: f32[2,10,10,16], index: 0, kind: input, shape index: {}, may-alias: {0,1,2}]   ;;  %s1764_s1 = inlined_call_operand.vmem [shape: f32[2,10,10,16], index: 1, kind: input, shape index: {}, may-alias: {0,1,2}]   ;;  %s1765_s2 = inlined_call_operand.vmem [shape: f32[2,10,10,16], index: 2, kind: input, shape index: {}, may-alias: {0,1,2}]   ;;  %s1766_s3 = inlined_call_operand.vmem [shape: f32[3,3,16,32], index: 3, kind: input, shape index: {}]   ;;  %s1767_s4 = inlined_call_operand.hbm [shape: f32[2,8,8,32], index: 4, kind: output, shape index: {}]  }
   0x1   :  { %11 = vsyncpa [#allocation3 + $0x1], 0  ;;  %s1511_s15 = smov 0   ;;  %s1513_s16 = smov 0  }
   0x2   :  { %s1515_s17 = smov 0   ;;  %s1517_s18 = smov 0  }
   0x3   :  { %s1519_s19 = smov 0   ;;  %s1521_s20 = smov 0  }
   0x4   :  { %s1523_s21 = smov 0   ;;  %s1525_s22 = smov 0  }
   0x5 LB: > { %s1153_s23 = sadd.s32 4294967295, %s1480_s22   ;;  %s1154_s24 = sadd.s32 4294967294, %s1480_s22   ;;  %s1480_s22 = sphi %s1525_s22, %s17_s22   ;;  %s1476_s21 = sphi %s1523_s21, %s1780_s21   ;;  %s1472_s20 = sphi %s1521_s20, %s1779_s20   ;;  %s1468_s19 = sphi %s1519_s19, %s1778_s19   ;;  %s1464_s18 = sphi %s1517_s18, %s1777_s18   ;;  %s1460_s17 = sphi %s1515_s17, %s1776_s17   ;;  %s1456_s16 = sphi %s1513_s16, %s1775_s16   ;;  %s1452_s15 = sphi %s1511_s15, %s1774_s15  }
   0x6   : > { %s26_s25 = sadd.s32 1, %s1472_s20  ;;  %s29_s26 = sadd.s32 1, %s1476_s21 }
   0x7   : > { %p27_p0 = scmp.ge.s32.totalorder %s26_s25, 8  ;;  %p157_p1 = scmp.ne.s32.totalorder %s1460_s17, %s1456_s16 }
   0x8   : > { %p158_p2 = scmp.eq.s32.totalorder %s1153_s23, 15  ;;  %p163_p5 = scmp.ne.s32.totalorder %s1456_s16, %s1452_s15 }
   0x9   : > { %s1782_s25 = smov (%p27_p0, %s26_s25), 0  ;;  %s1784_s26 = smov (!%p27_p0, %s29_s26), %s1476_s21 }
   0xa   : > { %s143_s27 = ssub.s32 %s1472_s20, %s1782_s25  ;;  %p1562_p3 = por %p158_p2, %p157_p1 }
   0xb   : > { %p31_p4 = scmp.ge.s32.totalorder %s1784_s26, 2  ;;  %p164_p6 = scmp.eq.s32.totalorder %s1154_s24, 15 }
   0xc   : > { %p1157_p7 = scmp.ge.s32.totalorder %s1480_s22, 1  ;;  %p225_p9 = scmp.lt.s32.totalorder %s1480_s22, 17 }
   0xd   : > { %s1786_s26 = smov (%p31_p4, %s1784_s26), 0  ;;  %p1571_p8 = por %p164_p6, %p163_p5 }
   0xe   : > { %1770 = sst [smem:[#allocation5_spill]] %s1786_s26  ;;  %s142_s30 = ssub.s32 %s1476_s21, %s1786_s26 }
   0xf   : > { %s147_s5 = sadd.s32 1, %s1460_s17  ;;  %s144_s6 = sor.u32 %s143_s27, %s142_s30 }
  0x10   : > { %p226_p10 = pnand %p1157_p7, %p225_p9  ;;  %p145_p11 = scmp.eq.s32.totalorder %s144_s6, 0 }
  0x11   : > { %v320_v0 = vld [vmem:[%s1766_s3 + $0x40] sm:$0xff] (!%p226_p10)  ;;  %v321_v1 = vld [vmem:[%s1766_s3 + $0x48] sm:$0xff] (!%p226_p10)  ;;  %v314_v2 = vld [vmem:[%s1766_s3 + $0x10] sm:$0xff] (!%p226_p10)  ;;  %v1482_v3 = vmov (!%p226_p10), 0.0|0.0   ;;  %p275_p12 = scmp.lt.s32.totalorder (!%p226_p10), %s1468_s19, 1  ;;  %p277_p13 = scmp.lt.s32.totalorder (!%p226_p10), %s1464_s18, 9 }
  0x12   : > { %s1580_s7 = scalar_select %p145_p11, %s1460_s17, %s147_s5  }
  0x13   : > { %229 = sbr.rel (%p226_p10) target bundleno = 299 (0x12b), region = 36  ;;  %1281 = vmatprep.subr.bf16.mxu0 (!%p226_p10), %v1482_v3  ;;  %1269 = vmatprep.subr.bf16.mxu1 (!%p226_p10), %v1482_v3  ;;  %v1282_v4 = vpack.c.bf16 (!%p226_p10), %v321_v1, %v320_v0  ;;  %v315_v5 = vld [vmem:[%s1766_s3 + $0x18] sm:$0xff] (!%p226_p10)  ;;  %vm1483_vm0 = vmmov (!%p226_p10), 0   ;;  %v1484_v7 = vmov (!%p226_p10), 0.0   ;;  %s284_s24 = sadd.s32 (!%p226_p10), 1, %s1464_s18  ;;  %v312_v8 = vld [vmem:[%s1766_s3] sm:$0xff] (!%p226_p10) }
  0x14   : > { %v1270_v6 = vpack.c.bf16 (!%p226_p10), %v315_v5, %v314_v2  ;;  %1210 = vmatprep.mubr.msk.f32.mxu1 (!%p226_p10), %vm1483_vm0, %v1484_v7  ;;  %1238 = vmatprep.mubr.msk.f32.mxu0 (!%p226_p10), %vm1483_vm0, %v1484_v7  ;;  %p287_p0 = scmp.lt.s32.totalorder (!%p226_p10), %s284_s24, 9  ;;  %v313_v9 = vld [vmem:[%s1766_s3 + $0x8] sm:$0xff] (!%p226_p10)  ;;  %s295_s26 = sadd.s32 (!%p226_p10), 2, %s1464_s18  ;;  %vm332_vm1 = vcmask (!%p226_p10), 1046528   ;;  %vm336_vm2 = vcmask (!%p226_p10), 130048   ;;  %v322_v16 = vld [vmem:[%s1766_s3 + $0x50] sm:$0xff] (!%p226_p10) }
  0x15   : > { %1283 = vmatpush3.bf16.msra.mxu0 (!%p226_p10), %v1282_v4  ;;  %v1273_v14 = vpack.c.bf16 (!%p226_p10), %v313_v9, %v312_v8  ;;  %p1622_p1 = scmp.lt.s32.totalorder (!%p226_p10), %s295_s26, 9  ;;  %v323_v17 = vld [vmem:[%s1766_s3 + $0x58] sm:$0xff] (!%p226_p10)  ;;  %v316_v18 = vld [vmem:[%s1766_s3 + $0x20] sm:$0xff] (!%p226_p10)  ;;  %v317_v21 = vld [vmem:[%s1766_s3 + $0x28] sm:$0xff] (!%p226_p10)  ;;  %vm481_vm3 = vcmask (!%p226_p10), 1045504   ;;  %vm1012_vm4 = vcmask (!%p226_p10), 261120  }
  0x16   : > { %1271 = vmatpush3.bf16.msra.mxu1 (!%p226_p10), %v1270_v6  ;;  %1284 = vmatprep.subr.bf16.mxu0 (!%p226_p10), %v1482_v3  ;;  %v1285_v24 = vpack.c.bf16 (!%p226_p10), %v323_v17, %v322_v16  ;;  %v1276_v26 = vpack.c.bf16 (!%p226_p10), %v317_v21, %v316_v18  ;;  %v324_v29 = vld [vmem:[%s1766_s3 + $0x60] sm:$0xff] (!%p226_p10)  ;;  %v325_v30 = vld [vmem:[%s1766_s3 + $0x68] sm:$0xff] (!%p226_p10)  ;;  %v318_v33 = vld [vmem:[%s1766_s3 + $0x30] sm:$0xff] (!%p226_p10)  ;;  %s1485_s13 = smov (!%p226_p10), [#allocation2]  }
  0x17   : > { %1272 = vmatprep.subr.bf16.mxu1 (!%p226_p10), %v1482_v3  ;;  %v319_v34 = vld [vmem:[%s1766_s3 + $0x38] sm:$0xff] (!%p226_p10)  ;;  %v1288_v36 = vpack.c.bf16 (!%p226_p10), %v325_v30, %v324_v29  ;;  %v326_v39 = vld [vmem:[%s1766_s3 + $0x70] sm:$0xff] (!%p226_p10)  ;;  %v328_v46 = vld [vmem:[%s1766_s3 + $0x80] sm:$0xff] (!%p226_p10) }
  0x18   : > { %v1279_v38 = vpack.c.bf16 (!%p226_p10), %v319_v34, %v318_v33  ;;  %v327_v40 = vld [vmem:[%s1766_s3 + $0x78] sm:$0xff] (!%p226_p10)  ;;  %v329_v47 = vld [vmem:[%s1766_s3 + $0x88] sm:$0xff] (!%p226_p10) }
  0x19   : > { %v1291_v42 = vpack.c.bf16 (!%p226_p10), %v327_v40, %v326_v39  ;;  %v1294_v49 = vpack.c.bf16 (!%p226_p10), %v329_v47, %v328_v46 }
  0x1a   : > { %s276_s27 = scalar_select %p275_p12, %s1468_s19, 1 }
  0x1b   : > { %s278_s30 = scalar_select %p277_p13, %s1464_s18, 9 }
  0x1c   : > { %s1606_s5 = smul.u32 20, %s276_s27  ;;  %s1788_s24 = smov (!%p287_p0, %s284_s24), 9 }
  0x1d   : > { %s1159_s6 = sshll.u32 %s278_s30, 1  ;;  %s1161_s30 = sshll.u32 %s1788_s24, 1 }
  0x1e   : > { %s281_s8 = sadd.s32 %s1606_s5, %s1159_s6  ;;  %s291_s6 = sadd.s32 %s1606_s5, %s1161_s30 }
  0x1f   : > { %s1160_s9 = sshll.u32 %s281_s8, 3  ;;  %s1790_s26 = smov (!%p1622_p1, %s295_s26), 9 }
  0x20   : > { %s283_s27 = scalar_lea.vmem %s1763_s0, %s1160_s9  ;;  %s1162_s9 = sshll.u32 %s291_s6, 3 }
  0x21   : > { %v306_v10 = vld [vmem:[%s283_s27] sm:$0xff]  ;;  %v307_v11 = vld [vmem:[%s283_s27 + $0x8] sm:$0x3]  ;;  %s293_s23 = scalar_lea.vmem %s1764_s1, %s1162_s9  ;;  %s1163_s9 = sshll.u32 %s1790_s26, 1 }
  0x22   : > { %v333_v12 = vrot.slane %v306_v10, 1  ;;  %v334_v13 = vrot.slane %v307_v11, 1  ;;  %v308_v19 = vld [vmem:[%s293_s23] sm:$0xff]  ;;  %v309_v20 = vld [vmem:[%s293_s23 + $0x8] sm:$0x3]  ;;  %v483_v31 = vrot.slane %v307_v11, 2  ;;  %s302_s26 = sadd.s32 %s1606_s5, %s1163_s9 }
  0x23   : > { %v633_v22 = vrot.slane %v308_v19, 1  ;;  %v634_v23 = vrot.slane %v309_v20, 1  ;;  %v710_v27 = vrot.slane %v309_v20, 2  ;;  %v709_v28 = vrot.slane %v308_v19, 2  ;;  %s1164_s30 = sshll.u32 %s302_s26, 3  ;;  %s272_s23 = sand.u32 1, %s1456_s16  }
  0x24   : > { %v335_v15 = vsel %vm332_vm1, %v333_v12, %v334_v13  ;;  %v482_v32 = vrot.slane %v306_v10, 2  ;;  %s304_s10 = scalar_lea.vmem %s1765_s2, %s1164_s30  ;;  %s1158_s27 = sshll.u32 %s272_s23, 3 }
  0x25   : > { %1211 = vmatmul.mubr.msk.f32.vlgmr.msra.gmra.mrb[0].mxu1 %vm336_vm2, %v335_v15  ;;  %v635_v25 = vsel %vm332_vm1, %v633_v22, %v634_v23  ;;  %v711_v35 = vsel %vm481_vm3, %v709_v28, %v710_v27  ;;  %v310_v41 = vld [vmem:[%s304_s10] sm:$0xff]  ;;  %v311_v43 = vld [vmem:[%s304_s10 + $0x8] sm:$0x3]  ;;  %s1175_s30 = sshll.u32 %s1468_s19, 3  ;;  %s274_s10 = scalar_lea.vmem [#allocation2], %s1158_s27 }
  0x26   : > { %1274 = vmatpush3.bf16.msra.mxu1 %v1273_v14  ;;  %1217 = vmatprep.mubr.msk.f32.mxu1 %vm1483_vm0, %v1484_v7  ;;  %v484_v37 = vsel %vm481_vm3, %v482_v32, %v483_v31  ;;  %v860_v44 = vrot.slane %v310_v41, 1  ;;  %v861_v45 = vrot.slane %v311_v43, 1  ;;  %v936_v50 = vrot.slane %v310_v41, 2  ;;  %s1026_s5 = sadd.s32 %s1464_s18, %s1175_s30  ;;  %s1030_s9 = sshll.u32 %s274_s10, 4  ;;  %s1712_s9 = int_to_ptr.vmem [resolvable:$true] %s1030_s9 }
  0x27   : > { %1275 = vmatprep.subr.bf16.mxu1 %v1482_v3  ;;  %1239 = vmatmul.mubr.msk.f32.vlgmr.msra.gmra.mrb[0].mxu0 %vm336_vm2, %v635_v25  ;;  %v937_v51 = vrot.slane %v311_v43, 2  ;;  %s1176_s6 = sshll.u32 %s1026_s5, 7  ;;  %s1015_s19 = scalar_lea.sflag [#allocation3], %s272_s23 }
  0x28   : > { %1286 = vmatpush3.bf16.msra.mxu0 %v1285_v24  ;;  %1245 = vmatprep.mubr.msk.f32.mxu0 %vm1483_vm0, %v1484_v7  ;;  %v862_v48 = vsel %vm332_vm1, %v860_v44, %v861_v45  ;;  %s1710_s12 = scalar_lea.hbm %s1767_s4, %s1176_s6  ;;  %s1386_s18 = scalar_lea.vmem %s1712_s9, 128 }
  0x29   : > { %1287 = vmatprep.subr.bf16.mxu0 %v1482_v3  ;;  %v938_v52 = vsel %vm481_vm3, %v936_v50, %v937_v51  ;;  %p1387_p2 = scmp.ne.s32.totalorder %s1712_s9, %s1386_s18  ;;  %s1390_s26 = sshll.u32 %s1485_s13, 4  ;;  %s1391_s26 = int_to_ptr.vmem [resolvable:$false] %s1390_s26 }
  0x2a   : > { %s1392_s24 = scalar_lea.vmem %s1391_s26, 256  ;;  %p1393_p6 = scmp.lt.s32.totalorder %s1712_s9, %s1391_s26 }
  0x2b   : > { %p1388_p4 = pnand %p1387_p2, %p1562_p3  ;;  %p1394_p7 = scmp.lt.s32.totalorder %s1392_s24, %s1386_s18 }
  0x2d   : > { %1218 = vmatmul.mubr.msk.f32.vlgmr.msra.gmra.mrb[0].mxu1 %vm336_vm2, %v306_v10  ;;  %p1389_p5 = pneg %p1388_p4  ;;  %p1395_p9 = por %p1394_p7, %p1393_p6 }
  0x2e   : > { %1277 = vmatpush3.bf16.msra.mxu1 %v1276_v26  ;;  %1224 = vmatprep.mubr.msk.f32.mxu1 %vm1483_vm0, %v1484_v7 }
  0x2f   : > { %1278 = vmatprep.subr.bf16.mxu1 %v1482_v3  ;;  %1246 = vmatmul.mubr.msk.f32.vlgmr.msra.gmra.mrb[0].mxu0 %vm336_vm2, %v711_v35  ;;  %p1396_p10 = pnand %p1395_p9, %p1389_p5 }
  0x30   : > { %1289 = vmatpush3.bf16.msra.mxu0 %v1288_v36  ;;  %1252 = vmatprep.mubr.msk.f32.mxu0 %vm1483_vm0, %v1484_v7 }
  0x31   : > { %1290 = vmatprep.subr.bf16.mxu0 %v1482_v3 }
  0x35   : > { %1225 = vmatmul.mubr.msk.f32.vlgmr.msra.gmra.mrb[0].mxu1 %vm336_vm2, %v484_v37 }
  0x36   : > { %1280 = vmatpush3.bf16.msra.mxu1 %v1279_v38  ;;  %1231 = vmatprep.mubr.msk.f32.mxu1 %vm1483_vm0, %v1484_v7 }
  0x37   : > { %1253 = vmatmul.mubr.msk.f32.vlgmr.msra.gmra.mrb[0].mxu0 %vm336_vm2, %v310_v41 }
  0x38   : > { %1292 = vmatpush3.bf16.msra.mxu0 %v1291_v42  ;;  %1259 = vmatprep.mubr.msk.f32.mxu0 %vm1483_vm0, %v1484_v7 }
  0x39   : > { %1293 = vmatprep.subr.bf16.mxu0 %v1482_v3 }
  0x3d   : > { %1232 = vmatmul.mubr.msk.f32.vlgmr.msra.gmra.mrb[0].mxu1 %vm336_vm2, %v308_v19 }
  0x3f   : > { %1260 = vmatmul.mubr.msk.f32.vlgmr.msra.gmra.mrb[0].mxu0 %vm336_vm2, %v862_v48 }
  0x40   : > { %1295 = vmatpush3.bf16.msra.mxu0 %v1294_v49  ;;  %1266 = vmatprep.mubr.msk.f32.mxu0 %vm1483_vm0, %v1484_v7 }
  0x47   : > { %1267 = vmatmul.mubr.msk.f32.vlgmr.msra.gmra.mrb[0].mxu0 %vm336_vm2, %v938_v52 }
 0x110   : > { %v627_v53 = vpop.f32.mrb[0].mxu1 }
 0x111   : > { %v1233_v54 = vpop.f32.mrb[1].mxu1 }
 0x11a   : > { %v1007_v55 = vpop.f32.mrb[0].mxu0 }
 0x11b   : > { %v1296_v56 = vadd.f32 %v1007_v55, %v627_v53  ;;  %v1268_v57 = vpop.f32.mrb[1].mxu0 }
 0x11d   : > { %1013 = vst.msk [vmem:[%s274_s10] sm:$0xff] %vm1012_vm4, %v1296_v56 }
 0x11e   : > { %1399 = shalt.err (!%p1396_p10)
}
 0x11f   : > { %s1400_s14 = scalar_lea.hbm %s1710_s12, 128  ;;  %s1404_s30 = scalar_lea.hbm %s1767_s4, 2048 }
 0x120   : > { %p1401_p11 = scmp.ne.s32.totalorder %s1710_s12, %s1400_s14  ;;  %p1405_p0 = scmp.lt.u32.totalorder %s1710_s12, %s1767_s4 }
 0x121   : > { %p1406_p1 = scmp.lt.u32.totalorder %s1404_s30, %s1400_s14  ;;  %p1408_p4 = scmp.lt.u32.totalorder %s1400_s14, %s1710_s12 }
 0x122   : > { %p1402_p12 = pnand %p1401_p11, %p1562_p3 }
 0x123   : > { %p1407_p2 = por %p1406_p1, %p1405_p0 }
 0x124   : > { %p1403_p13 = pneg %p1402_p12 }
 0x125   : > { %p1409_p5 = por %p1408_p4, %p1407_p2 }
 0x127   : > { %p1410_p6 = pnand %p1409_p5, %p1403_p13 }
 0x129   : > { %1413 = shalt.err (!%p1410_p6)
}
 0x12a   : > { %1312 = dma.vmem_to_hbm [thread:$0]  (%p1562_p3), %s1712_s9, 128, %s1710_s12, %s1015_s19  }
 0x12b PF: > { %p1318_p7 = scmp.ge.s32.totalorder %s1480_s22, 2  ;;  %s1042_s10 = sand.u32 1, %s1452_s15  }
 0x12c   : > { %s1043_s8 = scalar_lea.sflag [#allocation3], %s1042_s10 }
 0x12d   : > { %p1315_p9 = pnand %p1318_p7, %p1571_p8 }
 0x12f   : > { %1447 = dma.done.wait (!%p1315_p9), %s1043_s8, 128  }
 0x130   : > { %1449 = vsyncadd (!%p1315_p9), %s1043_s8, 4294967168  ;;  %s17_s22 = sadd.s32 1, %s1480_s22   ;;  %s1773_s28 = sld [smem:[#allocation5_spill]] }
 0x131   : > { %p14_p10 = scmp.ge.s32.totalorder %s17_s22, 18   ;;  %s1774_s15 = smov %s1456_s16 }
 0x132   : > { %s1775_s16 = smov %s1460_s17  ;;  %s1776_s17 = smov %s1580_s7 }
 0x133   : > { %s1777_s18 = smov %s1472_s20  ;;  %s1778_s19 = smov %s1476_s21 }
 0x134   : > { %s1779_s20 = smov %s1782_s25  ;;  %16 = sbr.rel (!%p14_p10) target bundleno = 5 (0x5), region = 77 }
 0x136   : > { %s1780_s21 = smov %s1773_s28 }
 0x13b   :  { %1048 = vsyncpa [#allocation3], 1 }
 0x13c   :  { %1050 = vsyncpa [#allocation3 + $0x1], 1 }

// kernel: tattn_forward.4
= control target key start
LH: loop header
LB: loop body
LE: loop exit
PB: predicated region body
PF: predicated region fallthrough
CT: control target
= control target key end

     0   :  { %v3354_v2 = vmov 0.0   ;;  %vm3355_vm0 = vmmov 0   ;;  %s3356_s10 = smov 124   ;;  %s3357_s11 = smov 120   ;;  %vm27_vm1 = vcmask 31744   ;;  %vm1257_vm2 = vcmask 64512   ;;  %s3947_s0 = inlined_call_operand.vmem [shape: f32[16,8,24], index: 0, kind: input, shape index: {}]   ;;  %s3948_s1 = inlined_call_operand.vmem [shape: f32[16,128], index: 1, kind: output, shape index: {}]  }
   0x1   :  { %v8_v0 = vld [vmem:[%s3947_s0] sm:$0xff]  ;;  %v3383_v1 = vld [vmem:[%s3947_s0 + $0x10] sm:$0xff]  ;;  %3117 = vmatprep.subr.mxu0 %v3354_v2  ;;  %3119 = vmatprep.mubr.msk.f32.mxu0 %vm3355_vm0, %v3354_v2  ;;  %v9_v3 = vld [vmem:[%s3947_s0 + $0x8] sm:$0xff]  ;;  %s3362_s12 = smov 48   ;;  %s3363_s13 = smov 64   ;;  %vm2978_vm3 = vcmask 130048  }
   0x2   :  { %25 = vrot.lane.b32.xlu0 %v8_v0, %s3356_s10  ;;  %180 = vrot.lane.b32.xlu1 %v3383_v1, %s3356_s10  ;;  %v3397_v4 = vld [vmem:[%s3947_s0 + $0x18] sm:$0xff]  ;;  %v12_v5 = vld [vmem:[%s3947_s0 + $0x20] sm:$0xff]  ;;  %s3364_s14 = smov 80   ;;  %s3365_s15 = smov 96   ;;  %vm2981_vm4 = vcmask 261120   ;;  %vm2984_vm5 = vcmask 392192  }
   0x3   :  { %3122 = vmatprep.subr.mxu1 %v3354_v2  ;;  %3124 = vmatprep.mubr.msk.f32.mxu1 %vm3355_vm0, %v3354_v2  ;;  %v3411_v6 = vld [vmem:[%s3947_s0 + $0x28] sm:$0xff]  ;;  %v3419_v7 = vld [vmem:[%s3947_s0 + $0x30] sm:$0xff]  ;;  %v3424_v8 = vld [vmem:[%s3947_s0 + $0x38] sm:$0xff]  ;;  %s3366_s16 = smov 112   ;;  %vm2987_vm6 = vcmask 523264   ;;  %vm2990_vm7 = vcmask 654336  }
   0x4   :  { %v3433_v9 = vld [vmem:[%s3947_s0 + $0x40] sm:$0xff]  ;;  %v3438_v10 = vld [vmem:[%s3947_s0 + $0x48] sm:$0xff]  ;;  %v3447_v11 = vld [vmem:[%s3947_s0 + $0x50] sm:$0xff]  ;;  %vm2993_vm8 = vcmask 785408   ;;  %vm2996_vm9 = vcmask 916480  }
   0x5   :  { %v3452_v12 = vld [vmem:[%s3947_s0 + $0x58] sm:$0xff]  ;;  %v3461_v13 = vld [vmem:[%s3947_s0 + $0x60] sm:$0xff]  ;;  %v3466_v14 = vld [vmem:[%s3947_s0 + $0x68] sm:$0xff] }
   0x6   :  { %103 = vrot.lane.b32.xlu0 %v9_v3, %s3356_s10  ;;  %257 = vrot.lane.b32.xlu1 %v3397_v4, %s3356_s10  ;;  %v3475_v15 = vld [vmem:[%s3947_s0 + $0x70] sm:$0xff]  ;;  %v3480_v16 = vld [vmem:[%s3947_s0 + $0x78] sm:$0xff]  ;;  %s3360_s0 = smov 16  }
   0xa   :  { %334 = vrot.lane.b32.xlu0 %v12_v5, %s3356_s10  ;;  %411 = vrot.lane.b32.xlu1 %v3411_v6, %s3356_s10 }
   0xe   :  { %488 = vrot.lane.b32.xlu0 %v3419_v7, %s3356_s10  ;;  %565 = vrot.lane.b32.xlu1 %v3424_v8, %s3356_s10 }
  0x12   :  { %642 = vrot.lane.b32.xlu0 %v3433_v9, %s3356_s10  ;;  %719 = vrot.lane.b32.xlu1 %v3438_v10, %s3356_s10 }
  0x16   :  { %796 = vrot.lane.b32.xlu0 %v3447_v11, %s3356_s10  ;;  %873 = vrot.lane.b32.xlu1 %v3452_v12, %s3356_s10 }
  0x1a   :  { %950 = vrot.lane.b32.xlu0 %v3461_v13, %s3356_s10  ;;  %1027 = vrot.lane.b32.xlu1 %v3466_v14, %s3356_s10 }
  0x1e   :  { %1104 = vrot.lane.b32.xlu0 %v3475_v15, %s3356_s10  ;;  %1181 = vrot.lane.b32.xlu1 %v3480_v16, %s3356_s10  ;;  %s3361_s10 = smov 32  }
  0x22   :  { %1434 = vrot.lane.b32.xlu1 %v8_v0, %s3357_s11  ;;  %1510 = vrot.lane.b32.xlu0 %v9_v3, %s3357_s11 }
  0x26   :  { %1586 = vrot.lane.b32.xlu1 %v3383_v1, %s3357_s11  ;;  %1662 = vrot.lane.b32.xlu0 %v3397_v4, %s3357_s11 }
  0x2a   :  { %1738 = vrot.lane.b32.xlu1 %v12_v5, %s3357_s11  ;;  %1890 = vrot.lane.b32.xlu0 %v3419_v7, %s3357_s11 }
  0x2e   :  { %1814 = vrot.lane.b32.xlu1 %v3411_v6, %s3357_s11  ;;  %2042 = vrot.lane.b32.xlu0 %v3433_v9, %s3357_s11 }
  0x32   :  { %1966 = vrot.lane.b32.xlu1 %v3424_v8, %s3357_s11 }
  0x36   :  { %2118 = vrot.lane.b32.xlu1 %v3438_v10, %s3357_s11 }
  0x74   :  { %v26_v17 = vpop.permute.xlu0 %25  ;;  %v181_v18 = vpop.permute.xlu1 %180 }
  0x75   :  { %3118 = vmatpush3.xpose.msk.msra.mxu0 %vm27_vm1, %v26_v17 }
  0x76   :  { %3127 = vmatprep.subr.mxu0 %v3354_v2 }
  0x78   :  { %3120 = vmatmul.mubr.msk.f32.vlgmr.msra.gmra.mrb[0].mxu0 %vm27_vm1, %v8_v0  ;;  %v104_v19 = vpop.permute.xlu0 %103  ;;  %v258_v20 = vpop.permute.xlu1 %257 }
  0x79   :  { %3123 = vmatpush3.xpose.msk.msra.mxu1 %vm27_vm1, %v104_v19  ;;  %3128 = vmatpush3.xpose.msk.msra.mxu0 %vm27_vm1, %v181_v18 }
  0x7a   :  { %3129 = vmatprep.mubr.msk.f32.mxu0 %vm3355_vm0, %v3354_v2  ;;  %3132 = vmatprep.subr.mxu1 %v3354_v2 }
  0x7b   :  { %3137 = vmatprep.subr.mxu0 %v3354_v2 }
  0x7c   :  { %3125 = vmatmul.mubr.msk.f32.vlgmr.msra.gmra.mrb[0].mxu1 %vm27_vm1, %v9_v3  ;;  %3130 = vmatmul.mubr.msk.f32.vlgmr.msra.gmra.mrb[2].mxu0 %vm27_vm1, %v3383_v1  ;;  %v335_v21 = vpop.permute.xlu0 %334  ;;  %v412_v22 = vpop.permute.xlu1 %411 }
  0x7d   :  { %3133 = vmatpush3.xpose.msk.msra.mxu1 %vm27_vm1, %v258_v20  ;;  %3138 = vmatpush3.xpose.msk.msra.mxu0 %vm27_vm1, %v335_v21 }
  0x7e   :  { %3134 = vmatprep.mubr.msk.f32.mxu1 %vm3355_vm0, %v3354_v2  ;;  %3139 = vmatprep.mubr.msk.f32.mxu0 %vm3355_vm0, %v3354_v2 }
  0x7f   :  { %3142 = vmatprep.subr.mxu1 %v3354_v2  ;;  %3147 = vmatprep.subr.mxu0 %v3354_v2 }
  0x80   :  { %3135 = vmatmul.mubr.msk.f32.vlgmr.msra.gmra.mrb[2].mxu1 %vm27_vm1, %v3397_v4  ;;  %3140 = vmatmul.mubr.msk.f32.vlgmr.msra.gmra.mrb[4].mxu0 %vm27_vm1, %v12_v5  ;;  %v489_v23 = vpop.permute.xlu0 %488  ;;  %v566_v24 = vpop.permute.xlu1 %565 }
  0x81   :  { %3143 = vmatpush3.xpose.msk.msra.mxu1 %vm27_vm1, %v412_v22  ;;  %3148 = vmatpush3.xpose.msk.msra.mxu0 %vm27_vm1, %v489_v23 }
  0x82   :  { %3144 = vmatprep.mubr.msk.f32.mxu1 %vm3355_vm0, %v3354_v2  ;;  %3149 = vmatprep.mubr.msk.f32.mxu0 %vm3355_vm0, %v3354_v2 }
  0x83   :  { %3152 = vmatprep.subr.mxu1 %v3354_v2  ;;  %3157 = vmatprep.subr.mxu0 %v3354_v2 }
  0x84   :  { %3145 = vmatmul.mubr.msk.f32.vlgmr.msra.gmra.mrb[4].mxu1 %vm27_vm1, %v3411_v6  ;;  %3150 = vmatmul.mubr.msk.f32.vlgmr.msra.gmra.mrb[6].mxu0 %vm27_vm1, %v3419_v7  ;;  %v643_v25 = vpop.permute.xlu0 %642  ;;  %v720_v26 = vpop.permute.xlu1 %719 }
  0x85   :  { %3153 = vmatpush3.xpose.msk.msra.mxu1 %vm27_vm1, %v566_v24  ;;  %3158 = vmatpush3.xpose.msk.msra.mxu0 %vm27_vm1, %v643_v25 }
  0x86   :  { %3154 = vmatprep.mubr.msk.f32.mxu1 %vm3355_vm0, %v3354_v2  ;;  %3159 = vmatprep.mubr.msk.f32.mxu0 %vm3355_vm0, %v3354_v2 }
  0x87   :  { %3162 = vmatprep.subr.mxu1 %v3354_v2  ;;  %3167 = vmatprep.subr.mxu0 %v3354_v2 }
  0x88   :  { %3155 = vmatmul.mubr.msk.f32.vlgmr.msra.gmra.mrb[6].mxu1 %vm27_vm1, %v3424_v8  ;;  %3160 = vmatmul.mubr.msk.f32.vlgmr.msra.gmra.mrb[8].mxu0 %vm27_vm1, %v3433_v9  ;;  %v797_v27 = vpop.permute.xlu0 %796  ;;  %v874_v28 = vpop.permute.xlu1 %873 }
  0x89   :  { %3163 = vmatpush3.xpose.msk.msra.mxu1 %vm27_vm1, %v720_v26  ;;  %3168 = vmatpush3.xpose.msk.msra.mxu0 %vm27_vm1, %v797_v27 }
  0x8a   :  { %3164 = vmatprep.mubr.msk.f32.mxu1 %vm3355_vm0, %v3354_v2  ;;  %3169 = vmatprep.mubr.msk.f32.mxu0 %vm3355_vm0, %v3354_v2 }
  0x8b   :  { %3172 = vmatprep.subr.mxu1 %v3354_v2  ;;  %3177 = vmatprep.subr.mxu0 %v3354_v2 }
  0x8c   :  { %3165 = vmatmul.mubr.msk.f32.vlgmr.msra.gmra.mrb[8].mxu1 %vm27_vm1, %v3438_v10  ;;  %3170 = vmatmul.mubr.msk.f32.vlgmr.msra.gmra.mrb[10].mxu0 %vm27_vm1, %v3447_v11  ;;  %v951_v29 = vpop.permute.xlu0 %950  ;;  %v1028_v30 = vpop.permute.xlu1 %1027 }
  0x8d   :  { %3173 = vmatpush3.xpose.msk.msra.mxu1 %vm27_vm1, %v874_v28  ;;  %3178 = vmatpush3.xpose.msk.msra.mxu0 %vm27_vm1, %v951_v29 }
  0x8e   :  { %3174 = vmatprep.mubr.msk.f32.mxu1 %vm3355_vm0, %v3354_v2  ;;  %3179 = vmatprep.mubr.msk.f32.mxu0 %vm3355_vm0, %v3354_v2 }
  0x8f   :  { %3182 = vmatprep.subr.mxu1 %v3354_v2  ;;  %3187 = vmatprep.subr.mxu0 %v3354_v2 }
  0x90   :  { %3175 = vmatmul.mubr.msk.f32.vlgmr.msra.gmra.mrb[10].mxu1 %vm27_vm1, %v3452_v12  ;;  %3180 = vmatmul.mubr.msk.f32.vlgmr.msra.gmra.mrb[12].mxu0 %vm27_vm1, %v3461_v13  ;;  %v1105_v31 = vpop.permute.xlu0 %1104  ;;  %v1182_v32 = vpop.permute.xlu1 %1181 }
  0x91   :  { %3183 = vmatpush3.xpose.msk.msra.mxu1 %vm27_vm1, %v1028_v30  ;;  %3188 = vmatpush3.xpose.msk.msra.mxu0 %vm27_vm1, %v1105_v31 }
  0x92   :  { %3184 = vmatprep.mubr.msk.f32.mxu1 %vm3355_vm0, %v3354_v2  ;;  %3189 = vmatprep.mubr.msk.f32.mxu0 %vm3355_vm0, %v3354_v2 }
  0x93   :  { %3192 = vmatprep.subr.mxu1 %v3354_v2  ;;  %3197 = vmatprep.subr.mxu0 %v3354_v2 }
  0x94   :  { %3185 = vmatmul.mubr.msk.f32.vlgmr.msra.gmra.mrb[12].mxu1 %vm27_vm1, %v3466_v14  ;;  %3190 = vmatmul.mubr.msk.f32.vlgmr.msra.gmra.mrb[14].mxu0 %vm27_vm1, %v3475_v15  ;;  %v1435_v33 = vpop.permute.xlu1 %1434  ;;  %v1511_v34 = vpop.permute.xlu0 %1510 }
  0x95   :  { %3193 = vmatpush3.xpose.msk.msra.mxu1 %vm27_vm1, %v1182_v32  ;;  %3194 = vmatprep.mubr.msk.f32.mxu1 %vm3355_vm0, %v3354_v2 }
  0x96   :  { %3202 = vmatprep.subr.mxu1 %v3354_v2  ;;  %3199 = vmatprep.mubr.msk.f32.mxu0 %vm3355_vm0, %v3354_v2 }
  0x97   :  { %3198 = vmatpush3.msra.mxu0 %v1435_v33 }
  0x98   :  { %3195 = vmatmul.mubr.msk.f32.vlgmr.msra.gmra.mrb[14].mxu1 %vm27_vm1, %v3480_v16  ;;  %3207 = vmatprep.subr.mxu0 %v3354_v2  ;;  %v3670_v26 = vpop.permute.xlu1 %1586  ;;  %v3674_v28 = vpop.permute.xlu0 %1662 }
  0x99   :  { %3204 = vmatprep.mubr.msk.f32.mxu1 %vm3355_vm0, %v3354_v2  ;;  %3203 = vmatpush3.msra.mxu1 %v1511_v34 }
  0x9a   :  { %3212 = vmatprep.subr.mxu1 %v3354_v2 }
  0x9c   :  { %v3672_v27 = vpop.permute.xlu1 %1738  ;;  %v3678_v30 = vpop.permute.xlu0 %1890 }
  0xa0   :  { %v3676_v29 = vpop.permute.xlu1 %1814  ;;  %v3682_v31 = vpop.permute.xlu0 %2042 }
 0x14b   :  { %v3598_v35 = vpop.f32.mrb[0].mxu0 }
 0x14c   :  { %v3121_v36 = vpop.f32.mrb[1].mxu0  ;;  %v1258_v37 = vsel %vm1257_vm2, %v3598_v35, -inf }
 0x14d   :  { %1259 = vmax.xlane.f32.xlu0 %v1258_v37 }
 0x14f   :  { %v3602_v38 = vpop.f32.mrb[0].mxu1  ;;  %v3604_v39 = vpop.f32.mrb[2].mxu0 }
 0x150   :  { %v3126_v40 = vpop.f32.mrb[1].mxu1  ;;  %v3131_v41 = vpop.f32.mrb[3].mxu0  ;;  %v1264_v42 = vsel %vm1257_vm2, %v3604_v39, -inf  ;;  %v1261_v43 = vsel %vm1257_vm2, %v3602_v38, -inf }
 0x151   :  { %1265 = vmax.xlane.f32.xlu0 %v1264_v42  ;;  %1262 = vmax.xlane.f32.xlu1 %v1261_v43 }
 0x153   :  { %v3610_v44 = vpop.f32.mrb[2].mxu1  ;;  %v3612_v45 = vpop.f32.mrb[4].mxu0 }
 0x154   :  { %v3136_v46 = vpop.f32.mrb[3].mxu1  ;;  %v1267_v47 = vsel %vm1257_vm2, %v3610_v44, -inf  ;;  %v1270_v48 = vsel %vm1257_vm2, %v3612_v45, -inf  ;;  %v3141_v49 = vpop.f32.mrb[5].mxu0 }
 0x155   :  { %1268 = vmax.xlane.f32.xlu0 %v1267_v47  ;;  %1271 = vmax.xlane.f32.xlu1 %v1270_v48 }
 0x157   :  { %v3618_v50 = vpop.f32.mrb[4].mxu1  ;;  %v3620_v51 = vpop.f32.mrb[6].mxu0 }
 0x158   :  { %v3146_v52 = vpop.f32.mrb[5].mxu1  ;;  %v1273_v53 = vsel %vm1257_vm2, %v3618_v50, -inf  ;;  %v1276_v54 = vsel %vm1257_vm2, %v3620_v51, -inf  ;;  %v3151_v55 = vpop.f32.mrb[7].mxu0 }
 0x159   :  { %1274 = vmax.xlane.f32.xlu0 %v1273_v53  ;;  %1277 = vmax.xlane.f32.xlu1 %v1276_v54 }
 0x15b   :  { %v3626_v56 = vpop.f32.mrb[6].mxu1  ;;  %v3628_v57 = vpop.f32.mrb[8].mxu0 }
 0x15c   :  { %v3156_v58 = vpop.f32.mrb[7].mxu1  ;;  %v1279_v59 = vsel %vm1257_vm2, %v3626_v56, -inf  ;;  %v1282_v60 = vsel %vm1257_vm2, %v3628_v57, -inf  ;;  %v3161_v61 = vpop.f32.mrb[9].mxu0 }
 0x15d   :  { %1280 = vmax.xlane.f32.xlu0 %v1279_v59  ;;  %1283 = vmax.xlane.f32.xlu1 %v1282_v60 }
 0x15f   :  { %v3634_v62 = vpop.f32.mrb[8].mxu1  ;;  %v3636_v63 = vpop.f32.mrb[10].mxu0 }
 0x160   :  { %v3166_v0 = vpop.f32.mrb[9].mxu1  ;;  %v1285_v1 = vsel %vm1257_vm2, %v3634_v62, -inf  ;;  %v1288_v3 = vsel %vm1257_vm2, %v3636_v63, -inf  ;;  %v3171_v4 = vpop.f32.mrb[11].mxu0 }
 0x161   :  { %1286 = vmax.xlane.f32.xlu0 %v1285_v1  ;;  %1289 = vmax.xlane.f32.xlu1 %v1288_v3 }
 0x163   :  { %v3642_v5 = vpop.f32.mrb[10].mxu1  ;;  %v3644_v6 = vpop.f32.mrb[12].mxu0 }
 0x164   :  { %v3176_v7 = vpop.f32.mrb[11].mxu1  ;;  %v1291_v8 = vsel %vm1257_vm2, %v3642_v5, -inf  ;;  %v1294_v9 = vsel %vm1257_vm2, %v3644_v6, -inf  ;;  %v3181_v10 = vpop.f32.mrb[13].mxu0 }
 0x165   :  { %1292 = vmax.xlane.f32.xlu0 %v1291_v8  ;;  %1295 = vmax.xlane.f32.xlu1 %v1294_v9 }
 0x167   :  { %v3650_v17 = vpop.f32.mrb[12].mxu1  ;;  %v3652_v18 = vpop.f32.mrb[14].mxu0 }
 0x168   :  { %v3186_v19 = vpop.f32.mrb[13].mxu1  ;;  %v1297_v20 = vsel %vm1257_vm2, %v3650_v17, -inf  ;;  %v1300_v21 = vsel %vm1257_vm2, %v3652_v18, -inf  ;;  %v3191_v22 = vpop.f32.mrb[15].mxu0 }
 0x169   :  { %1298 = vmax.xlane.f32.xlu0 %v1297_v20  ;;  %1301 = vmax.xlane.f32.xlu1 %v1300_v21 }
 0x16b   :  { %v3658_v23 = vpop.f32.mrb[14].mxu1 }
 0x16c   :  { %v3196_v24 = vpop.f32.mrb[15].mxu1  ;;  %v1303_v25 = vsel %vm1257_vm2, %v3658_v23, -inf }
 0x16d   :  { %1304 = vmax.xlane.f32.xlu0 %v1303_v25 }
 0x17a   :  { %2270 = vrot.lane.b32.xlu1 %v3452_v12, %s3357_s11  ;;  %v3680_v12 = vpop.permute.xlu1 %1966 }
 0x17e   :  { %2422 = vrot.lane.b32.xlu1 %v3466_v14, %s3357_s11  ;;  %v3684_v14 = vpop.permute.xlu1 %2118 }
 0x183   :  { %2194 = vrot.lane.b32.xlu0 %v3447_v11, %s3357_s11 }
 0x187   :  { %2346 = vrot.lane.b32.xlu0 %v3461_v13, %s3357_s11 }
 0x1da   :  { %v1260_v11 = vpop.xlane.xlu0 %1259 }
 0x1db   :  { %v1306_v32 = vsub.f32 %v3598_v35, %v1260_v11 }
 0x1dd   :  { %v1322_v13 = vmul.f32 1.442695, %v1306_v32 }
 0x1de   :  { %v1263_v33 = vpop.xlane.xlu1 %1262  ;;  %v1266_v34 = vpop.xlane.xlu0 %1265 }
 0x1df   :  { %3290 = vpow2.f32 %v1322_v13  ;;  %v1307_v36 = vsub.f32 %v3602_v38, %v1263_v33  ;;  %v1308_v37 = vsub.f32 %v3604_v39, %v1266_v34 }
 0x1e1   :  { %v1324_v40 = vmul.f32 1.442695, %v1307_v36  ;;  %v1326_v41 = vmul.f32 1.442695, %v1308_v37 }
 0x1e2   :  { %v1272_v42 = vpop.xlane.xlu1 %1271  ;;  %v1269_v43 = vpop.xlane.xlu0 %1268 }
 0x1e3   :  { %3292 = vpow2.f32 %v1324_v40  ;;  %v1310_v46 = vsub.f32 %v3612_v45, %v1272_v42  ;;  %v1309_v47 = vsub.f32 %v3610_v44, %v1269_v43 }
 0x1e4   :  { %3294 = vpow2.f32 %v1326_v41 }
 0x1e5   :  { %v1330_v48 = vmul.f32 1.442695, %v1310_v46  ;;  %v1328_v35 = vmul.f32 1.442695, %v1309_v47 }
 0x1e6   :  { %v1278_v49 = vpop.xlane.xlu1 %1277  ;;  %v1275_v52 = vpop.xlane.xlu0 %1274 }
 0x1e7   :  { %3296 = vpow2.f32 %v1330_v48  ;;  %v1312_v53 = vsub.f32 %v3620_v51, %v1278_v49  ;;  %v1311_v38 = vsub.f32 %v3618_v50, %v1275_v52 }
 0x1e8   :  { %3298 = vpow2.f32 %v1328_v35 }
 0x1e9   :  { %v3693_v39 = vpop.eup %3290  ;;  %v1334_v54 = vmul.f32 1.442695, %v1312_v53  ;;  %v1332_v55 = vmul.f32 1.442695, %v1311_v38 }
 0x1ea   :  { %v1284_v58 = vpop.xlane.xlu1 %1283  ;;  %v1281_v59 = vpop.xlane.xlu0 %1280  ;;  %v1354_v44 = vsel %vm1257_vm2, %v3693_v39, 0.0 }
 0x1eb   :  { %3300 = vpow2.f32 %v1334_v54  ;;  %v1314_v45 = vsub.f32 %v3628_v57, %v1284_v58  ;;  %v1313_v60 = vsub.f32 %v3626_v56, %v1281_v59  ;;  %1355 = vadd.xlane.f32.xlu1 %v1354_v44 }
 0x1ec   :  { %3302 = vpow2.f32 %v1332_v55 }
 0x1ed   :  { %v3699_v51 = vpop.eup %3292  ;;  %v1338_v50 = vmul.f32 1.442695, %v1314_v45  ;;  %v1336_v61 = vmul.f32 1.442695, %v1313_v60 }
 0x1ee   :  { %v3701_v0 = vpop.eup %3294  ;;  %v1290_v1 = vpop.xlane.xlu1 %1289  ;;  %v1357_v4 = vsel %vm1257_vm2, %v3699_v51, 0.0 }
 0x1ef   :  { %v1287_v3 = vpop.xlane.xlu0 %1286  ;;  %3304 = vpow2.f32 %v1338_v50  ;;  %v1316_v7 = vsub.f32 %v3636_v63, %v1290_v1  ;;  %1358 = vadd.xlane.f32.xlu0 %v1357_v4  ;;  %v1360_v56 = vsel %vm1257_vm2, %v3701_v0, 0.0 }
 0x1f0   :  { %v1315_v57 = vsub.f32 %v3634_v62, %v1287_v3  ;;  %3306 = vpow2.f32 %v1336_v61  ;;  %1361 = vadd.xlane.f32.xlu1 %v1360_v56 }
 0x1f1   :  { %v3709_v8 = vpop.eup %3296  ;;  %v1342_v9 = vmul.f32 1.442695, %v1316_v7 }
 0x1f2   :  { %v1340_v10 = vmul.f32 1.442695, %v1315_v57  ;;  %v3711_v19 = vpop.eup %3298  ;;  %v1296_v20 = vpop.xlane.xlu1 %1295  ;;  %v1366_v22 = vsel %vm1257_vm2, %v3709_v8, 0.0 }
 0x1f3   :  { %v1293_v21 = vpop.xlane.xlu0 %1292  ;;  %3308 = vpow2.f32 %v1342_v9  ;;  %v1318_v62 = vsub.f32 %v3644_v6, %v1296_v20  ;;  %v1363_v24 = vsel %vm1257_vm2, %v3711_v19, 0.0 }
 0x1f4   :  { %v1317_v63 = vsub.f32 %v3642_v5, %v1293_v21  ;;  %3310 = vpow2.f32 %v1340_v10  ;;  %1367 = vadd.xlane.f32.xlu1 %v1366_v22  ;;  %1364 = vadd.xlane.f32.xlu0 %v1363_v24 }
 0x1f5   :  { %v3719_v25 = vpop.eup %3300  ;;  %v1346_v11 = vmul.f32 1.442695, %v1318_v62 }
 0x1f6   :  { %v1344_v32 = vmul.f32 1.442695, %v1317_v63  ;;  %v3721_v13 = vpop.eup %3302  ;;  %v1302_v33 = vpop.xlane.xlu1 %1301  ;;  %v1372_v36 = vsel %vm1257_vm2, %v3719_v25, 0.0 }
 0x1f7   :  { %v1299_v34 = vpop.xlane.xlu0 %1298  ;;  %3312 = vpow2.f32 %v1346_v11  ;;  %v1320_v5 = vsub.f32 %v3652_v18, %v1302_v33  ;;  %v1369_v37 = vsel %vm1257_vm2, %v3721_v13, 0.0 }
 0x1f8   :  { %v1319_v6 = vsub.f32 %v3650_v17, %v1299_v34  ;;  %3314 = vpow2.f32 %v1344_v32  ;;  %1373 = vadd.xlane.f32.xlu1 %v1372_v36  ;;  %1370 = vadd.xlane.f32.xlu0 %v1369_v37 }
 0x1f9   :  { %v3729_v40 = vpop.eup %3304  ;;  %v1350_v41 = vmul.f32 1.442695, %v1320_v5 }
 0x1fa   :  { %v1348_v42 = vmul.f32 1.442695, %v1319_v6  ;;  %v3731_v43 = vpop.eup %3306  ;;  %v1378_v47 = vsel %vm1257_vm2, %v3729_v40, 0.0  ;;  %v3770_v61 = vpop.permute.xlu1 %2270 }
 0x1fb   :  { %v1305_v46 = vpop.xlane.xlu0 %1304  ;;  %3316 = vpow2.f32 %v1350_v41  ;;  %v1375_v17 = vsel %vm1257_vm2, %v3731_v43, 0.0 }
 0x1fc   :  { %v1321_v18 = vsub.f32 %v3658_v23, %v1305_v46  ;;  %3318 = vpow2.f32 %v1348_v42  ;;  %1379 = vadd.xlane.f32.xlu1 %v1378_v47  ;;  %1376 = vadd.xlane.f32.xlu0 %v1375_v17 }
 0x1fd   :  { %v3738_v48 = vpop.eup %3308 }
 0x1fe   :  { %v1352_v35 = vmul.f32 1.442695, %v1321_v18  ;;  %v3740_v49 = vpop.eup %3310  ;;  %v1384_v52 = vsel %vm1257_vm2, %v3738_v48, 0.0  ;;  %v3774_v3 = vpop.permute.xlu1 %2422 }
 0x1ff   :  { %v1381_v53 = vsel %vm1257_vm2, %v3740_v49, 0.0  ;;  %v3772_v1 = vpop.permute.xlu0 %2194 }
 0x200   :  { %3320 = vpow2.f32 %v1352_v35  ;;  %1385 = vadd.xlane.f32.xlu1 %v1384_v52  ;;  %1382 = vadd.xlane.f32.xlu0 %v1381_v53 }
 0x201   :  { %v3746_v23 = vpop.eup %3312 }
 0x202   :  { %v3748_v38 = vpop.eup %3314  ;;  %v1390_v54 = vsel %vm1257_vm2, %v3746_v23, 0.0 }
 0x203   :  { %v1387_v55 = vsel %vm1257_vm2, %v3748_v38, 0.0  ;;  %v3776_v4 = vpop.permute.xlu0 %2346 }
 0x204   :  { %1391 = vadd.xlane.f32.xlu1 %v1390_v54  ;;  %1388 = vadd.xlane.f32.xlu0 %v1387_v55  ;;  %v3358_v55 = vmov 1983009808  }
 0x205   :  { %v3754_v58 = vpop.eup %3316 }
 0x206   :  { %v3756_v59 = vpop.eup %3318  ;;  %v1396_v44 = vsel %vm1257_vm2, %v3754_v58, 0.0 }
 0x207   :  { %v1393_v45 = vsel %vm1257_vm2, %v3756_v59, 0.0 }
 0x208   :  { %1397 = vadd.xlane.f32.xlu1 %v1396_v44  ;;  %1394 = vadd.xlane.f32.xlu0 %v1393_v45 }
 0x20a   :  { %v3762_v60 = vpop.eup %3320 }
 0x20b   :  { %v1399_v50 = vsel %vm1257_vm2, %v3762_v60, 0.0 }
 0x20c   :  { %1400 = vadd.xlane.f32.xlu0 %v1399_v50 }
 0x219   :  { %2574 = vrot.lane.b32.xlu1 %v3480_v16, %s3357_s11 }
 0x222   :  { %2498 = vrot.lane.b32.xlu0 %v3475_v15, %s3357_s11 }
 0x278   :  { %v1356_v7 = vpop.xlane.xlu1 %1355 }
 0x279   :  { %3322 = vrcp.f32 %v1356_v7 }
 0x27c   :  { %v1359_v57 = vpop.xlane.xlu0 %1358 }
 0x27d   :  { %v1362_v56 = vpop.xlane.xlu1 %1361  ;;  %3324 = vrcp.f32 %v1359_v57 }
 0x27e   :  { %3326 = vrcp.f32 %v1362_v56 }
 0x281   :  { %v1368_v9 = vpop.xlane.xlu1 %1367  ;;  %v1365_v10 = vpop.xlane.xlu0 %1364 }
 0x282   :  { %3328 = vrcp.f32 %v1368_v9 }
 0x283   :  { %v3323_v16 = vpop.eup %3322  ;;  %3330 = vrcp.f32 %v1365_v10 }
 0x284   :  { %v1403_v15 = vmul.f32 %v3323_v16, %v3693_v39 }
 0x285   :  { %v1374_v20 = vpop.xlane.xlu1 %1373  ;;  %v1371_v21 = vpop.xlane.xlu0 %1370 }
 0x286   :  { %3332 = vrcp.f32 %v1374_v20  ;;  %3200 = vmatmul.mubr.msk.f32.vlgmr.msra.gmra.mrb[16].mxu0 %vm1257_vm2, %v1403_v15  ;;  %v3359_v15 = vmov 1934713408  }
 0x287   :  { %v3325_v22 = vpop.eup %3324  ;;  %3334 = vrcp.f32 %v1371_v21  ;;  %3208 = vmatpush3.msra.mxu0 %v3670_v26  ;;  %3209 = vmatprep.mubr.msk.f32.mxu0 %vm3355_vm0, %v3354_v2  ;;  %v2717_v20 = vunpack.c.l.s4 %v3359_v15 }
 0x288   :  { %v3327_v62 = vpop.eup %3326  ;;  %v1405_v63 = vmul.f32 %v3325_v22, %v3699_v51  ;;  %3217 = vmatprep.subr.mxu0 %v3354_v2 }
 0x289   :  { %v1407_v24 = vmul.f32 %v3327_v62, %v3701_v0  ;;  %v1380_v39 = vpop.xlane.xlu1 %1379  ;;  %v1377_v11 = vpop.xlane.xlu0 %1376 }
 0x28a   :  { %3336 = vrcp.f32 %v1380_v39  ;;  %3205 = vmatmul.mubr.msk.f32.vlgmr.msra.gmra.mrb[16].mxu1 %vm1257_vm2, %v1405_v63 }
 0x28b   :  { %3338 = vrcp.f32 %v1377_v11  ;;  %3210 = vmatmul.mubr.msk.f32.vlgmr.msra.gmra.mrb[18].mxu0 %vm1257_vm2, %v1407_v24  ;;  %3213 = vmatpush3.msra.mxu1 %v3674_v28 }
 0x28c   :  { %v3329_v26 = vpop.eup %3328  ;;  %3218 = vmatpush3.msra.mxu0 %v3672_v27  ;;  %3214 = vmatprep.mubr.msk.f32.mxu1 %vm3355_vm0, %v3354_v2 }
 0x28d   :  { %v3331_v51 = vpop.eup %3330  ;;  %v1411_v32 = vmul.f32 %v3329_v26, %v3709_v8  ;;  %v1386_v0 = vpop.xlane.xlu1 %1385  ;;  %3219 = vmatprep.mubr.msk.f32.mxu0 %vm3355_vm0, %v3354_v2  ;;  %3222 = vmatprep.subr.mxu1 %v3354_v2 }
 0x28e   :  { %v1383_v33 = vpop.xlane.xlu0 %1382  ;;  %v1409_v34 = vmul.f32 %v3331_v51, %v3711_v19  ;;  %3340 = vrcp.f32 %v1386_v0  ;;  %3227 = vmatprep.subr.mxu0 %v3354_v2 }
 0x28f   :  { %3342 = vrcp.f32 %v1383_v33  ;;  %3220 = vmatmul.mubr.msk.f32.vlgmr.msra.gmra.mrb[20].mxu0 %vm1257_vm2, %v1411_v32 }
 0x290   :  { %v3333_v27 = vpop.eup %3332  ;;  %3215 = vmatmul.mubr.msk.f32.vlgmr.msra.gmra.mrb[18].mxu1 %vm1257_vm2, %v1409_v34  ;;  %3228 = vmatpush3.msra.mxu0 %v3678_v30 }
 0x291   :  { %v3335_v28 = vpop.eup %3334  ;;  %v1415_v8 = vmul.f32 %v3333_v27, %v3719_v25  ;;  %3223 = vmatpush3.msra.mxu1 %v3676_v29  ;;  %v1392_v36 = vpop.xlane.xlu1 %1391  ;;  %3224 = vmatprep.mubr.msk.f32.mxu1 %vm3355_vm0, %v3354_v2 }
 0x292   :  { %v1389_v5 = vpop.xlane.xlu0 %1388  ;;  %v1413_v19 = vmul.f32 %v3335_v28, %v3721_v13  ;;  %3344 = vrcp.f32 %v1392_v36  ;;  %3229 = vmatprep.mubr.msk.f32.mxu0 %vm3355_vm0, %v3354_v2  ;;  %3232 = vmatprep.subr.mxu1 %v3354_v2  ;;  %v2718_v28 = vunpack.c.0.s8 %v2717_v20 }
 0x293   :  { %3346 = vrcp.f32 %v1389_v5  ;;  %3237 = vmatprep.subr.mxu0 %v3354_v2  ;;  %3230 = vmatmul.mubr.msk.f32.vlgmr.msra.gmra.mrb[22].mxu0 %vm1257_vm2, %v1415_v8 }
 0x294   :  { %v3337_v30 = vpop.eup %3336  ;;  %3225 = vmatmul.mubr.msk.f32.vlgmr.msra.gmra.mrb[20].mxu1 %vm1257_vm2, %v1413_v19  ;;  %3238 = vmatpush3.msra.mxu0 %v3682_v31 }
 0x295   :  { %v3339_v29 = vpop.eup %3338  ;;  %v1419_v25 = vmul.f32 %v3337_v30, %v3729_v40  ;;  %3233 = vmatpush3.msra.mxu1 %v3680_v12  ;;  %v1398_v13 = vpop.xlane.xlu1 %1397  ;;  %3234 = vmatprep.mubr.msk.f32.mxu1 %vm3355_vm0, %v3354_v2 }
 0x296   :  { %v1395_v6 = vpop.xlane.xlu0 %1394  ;;  %v1417_v37 = vmul.f32 %v3339_v29, %v3731_v43  ;;  %3348 = vrcp.f32 %v1398_v13  ;;  %3239 = vmatprep.mubr.msk.f32.mxu0 %vm3355_vm0, %v3354_v2  ;;  %3242 = vmatprep.subr.mxu1 %v3354_v2 }
 0x297   :  { %3350 = vrcp.f32 %v1395_v6  ;;  %3247 = vmatprep.subr.mxu0 %v3354_v2  ;;  %3240 = vmatmul.mubr.msk.f32.vlgmr.msra.gmra.mrb[24].mxu0 %vm1257_vm2, %v1419_v25 }
 0x298   :  { %v3341_v31 = vpop.eup %3340  ;;  %3235 = vmatmul.mubr.msk.f32.vlgmr.msra.gmra.mrb[22].mxu1 %vm1257_vm2, %v1417_v37  ;;  %3248 = vmatpush3.msra.mxu0 %v3772_v1 }
 0x299   :  { %v3343_v12 = vpop.eup %3342  ;;  %v1423_v40 = vmul.f32 %v3341_v31, %v3738_v48  ;;  %3243 = vmatpush3.msra.mxu1 %v3684_v14  ;;  %3244 = vmatprep.mubr.msk.f32.mxu1 %vm3355_vm0, %v3354_v2  ;;  %v2575_v52 = vpop.permute.xlu1 %2574 }
 0x29a   :  { %v1401_v41 = vpop.xlane.xlu0 %1400  ;;  %v1421_v42 = vmul.f32 %v3343_v12, %v3740_v49  ;;  %3249 = vmatprep.mubr.msk.f32.mxu0 %vm3355_vm0, %v3354_v2  ;;  %3252 = vmatprep.subr.mxu1 %v3354_v2 }
 0x29b   :  { %3352 = vrcp.f32 %v1401_v41  ;;  %3257 = vmatprep.subr.mxu0 %v3354_v2  ;;  %3250 = vmatmul.mubr.msk.f32.vlgmr.msra.gmra.mrb[26].mxu0 %vm1257_vm2, %v1423_v40 }
 0x29c   :  { %v3345_v43 = vpop.eup %3344  ;;  %3245 = vmatmul.mubr.msk.f32.vlgmr.msra.gmra.mrb[24].mxu1 %vm1257_vm2, %v1421_v42  ;;  %3258 = vmatpush3.msra.mxu0 %v3776_v4 }
 0x29d   :  { %v3347_v14 = vpop.eup %3346  ;;  %v1427_v46 = vmul.f32 %v3345_v43, %v3746_v23  ;;  %3253 = vmatpush3.msra.mxu1 %v3770_v61  ;;  %3254 = vmatprep.mubr.msk.f32.mxu1 %vm3355_vm0, %v3354_v2 }
 0x29e   :  { %v2499_v47 = vpop.permute.xlu0 %2498  ;;  %v1425_v18 = vmul.f32 %v3347_v14, %v3748_v38  ;;  %3259 = vmatprep.mubr.msk.f32.mxu0 %vm3355_vm0, %v3354_v2  ;;  %3262 = vmatprep.subr.mxu1 %v3354_v2 }
 0x29f   :  { %3260 = vmatmul.mubr.msk.f32.vlgmr.msra.gmra.mrb[28].mxu0 %vm1257_vm2, %v1427_v46  ;;  %3267 = vmatprep.subr.mxu0 %v3354_v2 }
 0x2a0   :  { %v3349_v17 = vpop.eup %3348  ;;  %3255 = vmatmul.mubr.msk.f32.vlgmr.msra.gmra.mrb[26].mxu1 %vm1257_vm2, %v1425_v18  ;;  %3268 = vmatpush3.msra.mxu0 %v2499_v47 }
 0x2a1   :  { %v3351_v48 = vpop.eup %3350  ;;  %v1431_v35 = vmul.f32 %v3349_v17, %v3754_v58  ;;  %3263 = vmatpush3.msra.mxu1 %v3774_v3  ;;  %3264 = vmatprep.mubr.msk.f32.mxu1 %vm3355_vm0, %v3354_v2  ;;  %v2653_v58 = vunpack.c.l.s4 %v3358_v55 }
 0x2a2   :  { %v1429_v49 = vmul.f32 %v3351_v48, %v3756_v59  ;;  %3269 = vmatprep.mubr.msk.f32.mxu0 %vm3355_vm0, %v3354_v2  ;;  %3272 = vmatprep.subr.mxu1 %v3354_v2  ;;  %v2655_v59 = vlaneseq }
 0x2a3   :  { %3270 = vmatmul.mubr.msk.f32.vlgmr.msra.gmra.mrb[30].mxu0 %vm1257_vm2, %v1431_v35  ;;  %v2654_v50 = vunpack.c.0.s8 %v2653_v58 }
 0x2a4   :  { %3265 = vmatmul.mubr.msk.f32.vlgmr.msra.gmra.mrb[28].mxu1 %vm1257_vm2, %v1429_v49  ;;  %v2656_v61 = vshrl.u32 %v2655_v59, 7 }
 0x2a5   :  { %v3353_v53 = vpop.eup %3352  ;;  %3273 = vmatpush3.msra.mxu1 %v2575_v52  ;;  %3274 = vmatprep.mubr.msk.f32.mxu1 %vm3355_vm0, %v3354_v2 }
 0x2a6   :  { %v1433_v23 = vmul.f32 %v3353_v53, %v3762_v60  ;;  %v3862_v60 = vsub.s32 %v2654_v50, %v2656_v61  ;;  %v3868_v25 = vsub.s32 %v2718_v28, %v2656_v61 }
 0x2a8   :  { %3275 = vmatmul.mubr.msk.f32.vlgmr.msra.gmra.mrb[30].mxu1 %vm1257_vm2, %v1433_v23 }
 0x359   :  { %v1506_v38 = vpop.f32.mrb[16].mxu0 }
 0x35a   :  { %v3201_v54 = vpop.f32.mrb[17].mxu0 }
 0x35d   :  { %v1582_v44 = vpop.f32.mrb[16].mxu1 }
 0x35e   :  { %v1658_v45 = vpop.f32.mrb[18].mxu0  ;;  %v3206_v1 = vpop.f32.mrb[17].mxu1 }
 0x35f   :  { %v2650_v3 = vcombine.low %v1506_v38, %v1658_v45  ;;  %v2651_v4 = vcombine.high %v1506_v38, %v1658_v45  ;;  %v3211_v7 = vpop.f32.mrb[19].mxu0 }
 0x361   :  { %v2658_v21 = vrot.slane %v2650_v3, %v3862_v60  ;;  %v2665_v22 = vrot.slane %v2651_v4, %v3862_v60 }
 0x362   :  { %v1810_v57 = vpop.f32.mrb[20].mxu0 }
 0x363   :  { %v1734_v56 = vpop.f32.mrb[18].mxu1  ;;  %v3221_v2 = vpop.f32.mrb[21].mxu0 }
 0x364   :  { %v2666_v9 = vcombine.low %v1582_v44, %v1734_v56  ;;  %v2667_v10 = vcombine.high %v1582_v44, %v1734_v56  ;;  %v3216_v16 = vpop.f32.mrb[19].mxu1 }
 0x366   :  { %v2674_v62 = vrot.slane %v2666_v9, %v3862_v60  ;;  %v2681_v63 = vrot.slane %v2667_v10, %v3862_v60  ;;  %v1962_v24 = vpop.f32.mrb[22].mxu0 }
 0x367   :  { %v1886_v39 = vpop.f32.mrb[20].mxu1  ;;  %v2682_v11 = vcombine.low %v1810_v57, %v1962_v24  ;;  %v2683_v26 = vcombine.high %v1810_v57, %v1962_v24  ;;  %v3231_v51 = vpop.f32.mrb[23].mxu0 }
 0x368   :  { %v2714_v32 = vcombine.low %v2658_v21, %v2674_v62  ;;  %v2715_v0 = vcombine.high %v2658_v21, %v2674_v62  ;;  %v2730_v33 = vcombine.low %v2665_v22, %v2681_v63  ;;  %v2731_v34 = vcombine.high %v2665_v22, %v2681_v63  ;;  %v3226_v27 = vpop.f32.mrb[21].mxu1 }
 0x369   :  { %v2690_v13 = vrot.slane %v2682_v11, %v3862_v60  ;;  %v2697_v6 = vrot.slane %v2683_v26, %v3862_v60 }
 0x36a   :  { %v2114_v8 = vpop.f32.mrb[24].mxu0  ;;  %v3875_v48 = vrot.slane %v2714_v32, %v3868_v25  ;;  %v2729_v35 = vrot.slane %v2715_v0, %v3868_v25  ;;  %v2738_v44 = vrot.slane %v2730_v33, %v3868_v25  ;;  %v3892_v45 = vrot.slane %v2731_v34, %v3868_v25 }
 0x36b   :  { %v2038_v36 = vpop.f32.mrb[22].mxu1  ;;  %v3241_v5 = vpop.f32.mrb[25].mxu0 }
 0x36c   :  { %v2698_v19 = vcombine.low %v1886_v39, %v2038_v36  ;;  %v2699_v30 = vcombine.high %v1886_v39, %v2038_v36  ;;  %v3236_v29 = vpop.f32.mrb[23].mxu1 }
 0x36e   :  { %v2706_v37 = vrot.slane %v2698_v19, %v3862_v60  ;;  %v2713_v31 = vrot.slane %v2699_v30, %v3862_v60  ;;  %v2266_v12 = vpop.f32.mrb[26].mxu0 }
 0x36f   :  { %v2190_v40 = vpop.f32.mrb[24].mxu1  ;;  %v2786_v41 = vcombine.low %v2114_v8, %v2266_v12  ;;  %v2787_v42 = vcombine.high %v2114_v8, %v2266_v12  ;;  %v3251_v43 = vpop.f32.mrb[27].mxu0 }
 0x370   :  { %v2746_v14 = vcombine.low %v2690_v13, %v2706_v37  ;;  %v2747_v46 = vcombine.high %v2690_v13, %v2706_v37  ;;  %v2762_v47 = vcombine.low %v2697_v6, %v2713_v31  ;;  %v2763_v18 = vcombine.high %v2697_v6, %v2713_v31  ;;  %v3246_v17 = vpop.f32.mrb[25].mxu1 }
 0x371   :  { %v2794_v54 = vrot.slane %v2786_v41, %v3862_v60  ;;  %v2801_v55 = vrot.slane %v2787_v42, %v3862_v60 }
 0x372   :  { %v2418_v49 = vpop.f32.mrb[28].mxu0  ;;  %v3879_v52 = vrot.slane %v2746_v14, %v3868_v25  ;;  %v2761_v53 = vrot.slane %v2747_v46, %v3868_v25  ;;  %v3883_v23 = vrot.slane %v2762_v47, %v3868_v25  ;;  %v3886_v38 = vrot.slane %v2763_v18, %v3868_v25 }
 0x373   :  { %v2342_v58 = vpop.f32.mrb[26].mxu1  ;;  %v3261_v59 = vpop.f32.mrb[29].mxu0 }
 0x374   :  { %v2802_v50 = vcombine.low %v2190_v40, %v2342_v58  ;;  %v2803_v61 = vcombine.high %v2190_v40, %v2342_v58  ;;  %v3256_v1 = vpop.f32.mrb[27].mxu1  ;;  %v2779_v3 = vcombine.high %v3875_v48, %v3879_v52  ;;  %v2780_v4 = vcombine.low %v2729_v35, %v2761_v53 }
 0x375   :  { %v2781_v7 = vcombine.high %v2729_v35, %v2761_v53  ;;  %v2782_v57 = vcombine.low %v2738_v44, %v3883_v23  ;;  %v2783_v56 = vcombine.high %v2738_v44, %v3883_v23  ;;  %v2784_v2 = vcombine.low %v3892_v45, %v3886_v38 }
 0x376   :  { %v2810_v9 = vrot.slane %v2802_v50, %v3862_v60  ;;  %v2817_v10 = vrot.slane %v2803_v61, %v3862_v60  ;;  %2924 = vrot.lane.b32.xlu0 %v2779_v3, %s3360_s0  ;;  %v2570_v16 = vpop.f32.mrb[30].mxu0  ;;  %v2785_v15 = vcombine.high %v3892_v45, %v3886_v38  ;;  %v2778_v20 = vcombine.low %v3875_v48, %v3879_v52 }
 0x377   :  { %v2494_v21 = vpop.f32.mrb[28].mxu1  ;;  %v2818_v22 = vcombine.low %v2418_v49, %v2570_v16  ;;  %v2819_v62 = vcombine.high %v2418_v49, %v2570_v16  ;;  %v3271_v63 = vpop.f32.mrb[31].mxu0 }
 0x378   :  { %v2850_v24 = vcombine.low %v2794_v54, %v2810_v9  ;;  %v2851_v39 = vcombine.high %v2794_v54, %v2810_v9  ;;  %v2866_v11 = vcombine.low %v2801_v55, %v2817_v10  ;;  %v2867_v26 = vcombine.high %v2801_v55, %v2817_v10  ;;  %v3266_v51 = vpop.f32.mrb[29].mxu1 }
 0x379   :  { %v2826_v27 = vrot.slane %v2818_v22, %v3862_v60  ;;  %v2833_v28 = vrot.slane %v2819_v62, %v3862_v60 }
 0x37a   :  { %2932 = vrot.lane.b32.xlu0 %v2780_v4, %s3361_s10  ;;  %v2858_v13 = vrot.slane %v2850_v24, %v3868_v25  ;;  %v2865_v6 = vrot.slane %v2851_v39, %v3868_v25  ;;  %v2874_v37 = vrot.slane %v2866_v11, %v3868_v25  ;;  %v2881_v41 = vrot.slane %v2867_v26, %v3868_v25 }
 0x37b   :  { %v2646_v32 = vpop.f32.mrb[30].mxu1 }
 0x37c   :  { %v2834_v0 = vcombine.low %v2494_v21, %v2646_v32  ;;  %v2835_v33 = vcombine.high %v2494_v21, %v2646_v32  ;;  %v3276_v34 = vpop.f32.mrb[31].mxu1 }
 0x37e   :  { %v2842_v8 = vrot.slane %v2834_v0, %v3862_v60  ;;  %v2849_v36 = vrot.slane %v2835_v33, %v3862_v60  ;;  %2940 = vrot.lane.b32.xlu0 %v2781_v7, %s3362_s12 }
 0x380   :  { %v2882_v5 = vcombine.low %v2826_v27, %v2842_v8  ;;  %v2883_v19 = vcombine.high %v2826_v27, %v2842_v8  ;;  %v2898_v30 = vcombine.low %v2833_v28, %v2849_v36  ;;  %v2899_v29 = vcombine.high %v2833_v28, %v2849_v36 }
 0x382   :  { %2948 = vrot.lane.b32.xlu0 %v2782_v57, %s3363_s13  ;;  %v2890_v31 = vrot.slane %v2882_v5, %v3868_v25  ;;  %v2897_v12 = vrot.slane %v2883_v19, %v3868_v25  ;;  %v2906_v60 = vrot.slane %v2898_v30, %v3868_v25  ;;  %v2913_v40 = vrot.slane %v2899_v29, %v3868_v25 }
 0x384   :  { %v2915_v42 = vcombine.high %v2858_v13, %v2890_v31  ;;  %v2916_v43 = vcombine.low %v2865_v6, %v2897_v12  ;;  %v2917_v14 = vcombine.high %v2865_v6, %v2897_v12  ;;  %v2918_v46 = vcombine.low %v2874_v37, %v2906_v60 }
 0x385   :  { %v2919_v47 = vcombine.high %v2874_v37, %v2906_v60  ;;  %v2920_v18 = vcombine.low %v2881_v41, %v2913_v40  ;;  %v2921_v17 = vcombine.high %v2881_v41, %v2913_v40  ;;  %v2914_v35 = vcombine.low %v2858_v13, %v2890_v31 }
 0x386   :  { %2956 = vrot.lane.b32.xlu0 %v2783_v56, %s3364_s14  ;;  %2926 = vrot.lane.b32.xlu1 %v2915_v42, %s3360_s0 }
 0x38a   :  { %2964 = vrot.lane.b32.xlu0 %v2784_v2, %s3365_s15  ;;  %2934 = vrot.lane.b32.xlu1 %v2916_v43, %s3361_s10 }
 0x38e   :  { %2972 = vrot.lane.b32.xlu0 %v2785_v15, %s3366_s16  ;;  %2942 = vrot.lane.b32.xlu1 %v2917_v14, %s3362_s12 }
 0x392   :  { %2950 = vrot.lane.b32.xlu1 %v2918_v46, %s3363_s13 }
 0x396   :  { %2958 = vrot.lane.b32.xlu1 %v2919_v47, %s3364_s14 }
 0x39a   :  { %2966 = vrot.lane.b32.xlu1 %v2920_v18, %s3365_s15 }
 0x39e   :  { %2974 = vrot.lane.b32.xlu1 %v2921_v17, %s3366_s16 }
 0x3e8   :  { %v2925_v25 = vpop.permute.xlu0 %2924 }
 0x3e9   :  { %v2979_v55 = vsel %vm2978_vm3, %v2778_v20, %v2925_v25 }
 0x3ec   :  { %v2933_v49 = vpop.permute.xlu0 %2932 }
 0x3ed   :  { %v2982_v58 = vsel %vm2981_vm4, %v2979_v55, %v2933_v49 }
 0x3f0   :  { %v2941_v53 = vpop.permute.xlu0 %2940 }
 0x3f1   :  { %v2985_v45 = vsel %vm2984_vm5, %v2982_v58, %v2941_v53 }
 0x3f4   :  { %v2949_v23 = vpop.permute.xlu0 %2948 }
 0x3f5   :  { %v2988_v50 = vsel %vm2987_vm6, %v2985_v45, %v2949_v23 }
 0x3f8   :  { %v2927_v38 = vpop.permute.xlu1 %2926  ;;  %v2957_v54 = vpop.permute.xlu0 %2956 }
 0x3f9   :  { %v2991_v61 = vsel %vm2990_vm7, %v2988_v50, %v2957_v54  ;;  %v2980_v57 = vsel %vm2978_vm3, %v2914_v35, %v2927_v38 }
 0x3fc   :  { %v2935_v59 = vpop.permute.xlu1 %2934  ;;  %v2965_v44 = vpop.permute.xlu0 %2964 }
 0x3fd   :  { %v2994_v1 = vsel %vm2993_vm8, %v2991_v61, %v2965_v44  ;;  %v2983_v56 = vsel %vm2981_vm4, %v2980_v57, %v2935_v59 }
 0x400   :  { %v2943_v3 = vpop.permute.xlu1 %2942  ;;  %v2973_v48 = vpop.permute.xlu0 %2972 }
 0x401   :  { %v2997_v52 = vsel %vm2996_vm9, %v2994_v1, %v2973_v48  ;;  %v2986_v9 = vsel %vm2984_vm5, %v2983_v56, %v2943_v3 }
 0x402   :  { %2999 = vst [vmem:[%s3948_s1] sm:$0xff] %v2997_v52 }
 0x404   :  { %v2951_v4 = vpop.permute.xlu1 %2950 }
 0x405   :  { %v2989_v10 = vsel %vm2987_vm6, %v2986_v9, %v2951_v4 }
 0x408   :  { %v2959_v7 = vpop.permute.xlu1 %2958 }
 0x409   :  { %v2992_v16 = vsel %vm2990_vm7, %v2989_v10, %v2959_v7 }
 0x40c   :  { %v2967_v2 = vpop.permute.xlu1 %2966 }
 0x40d   :  { %v2995_v15 = vsel %vm2993_vm8, %v2992_v16, %v2967_v2 }
 0x410   :  { %v2975_v20 = vpop.permute.xlu1 %2974 }
 0x411   :  { %v2998_v21 = vsel %vm2996_vm9, %v2995_v15, %v2975_v20 }
 0x412   :  { %3000 = vst [vmem:[%s3948_s1 + $0x8] sm:$0xff] %v2998_v21 }

</bundles_post_ra>
